<compile_context>
chip_gen: v5e
topology: v5e:2x2
jax: 0.10.0
libtpu: 0.0.40
codegen_flags: <defaults>
</compile_context>

<pallas_src>
import jax
import jax.numpy as jnp
from jax.experimental import pallas as pl
from jax.experimental.pallas import tpu as pltpu

BN_EPS = 1e-5
LANE = 128


def _round_up(x, m):
    return (x + m - 1) // m * m


def gtr_head_kernel(h_ref, w1_ref, b1_ref, w2_ref, b2_ref, out_ref, acc_ref):
    """h_ref: [b_blk, t_blk, D] tile of HuBERT hidden states."""
    t = pl.program_id(1)

    @pl.when(t == 0)
    def _():
        acc_ref[...] = jnp.zeros_like(acc_ref)

    # Partial sum over this T tile, accumulated in f32 (input may be bf16).
    h = h_ref[...].astype(jnp.float32)
    acc_ref[...] += jnp.sum(h, axis=1)

    @pl.when(t == pl.num_programs(1) - 1)
    def _():
        # fc1 with mean scale + eval BatchNorm + bias folded into (w1, b1).
        z = jnp.dot(acc_ref[...], w1_ref[...],
                    preferred_element_type=jnp.float32) + b1_ref[...]
        z = jnp.maximum(z, 0.0)        # ReLU; Dropout(p=0.5) is identity in eval
        out = jnp.dot(z, w2_ref[...],
                      preferred_element_type=jnp.float32) + b2_ref[...]
        out_ref[...] = out.astype(out_ref.dtype)


def gtr_classifier_forward(hidden_states, params, *, t_blk=None):
    """hidden_states: [B, T, 1024] (f32 or bf16); returns logits [B, C] f32."""
    B, T, D = hidden_states.shape
    H = params["w1"].shape[1]
    C = params["w2"].shape[1]
    itemsize = jnp.dtype(hidden_states.dtype).itemsize

    # ---- Fold 1/T mean, eval BatchNorm and b1 into fc1 (one-time, tiny). ----
    inv_std = jax.lax.rsqrt(params["bn_var"] + BN_EPS)          # [1, H]
    scale = params["bn_gamma"] * inv_std                        # [1, H]
    w1_f = params["w1"] * (scale / jnp.float32(T))              # [D, H]
    b1_f = (params["b1"] - params["bn_mean"]) * scale + params["bn_beta"]

    # ---- Lane-dense output: pad num_classes up to a multiple of 128. ----
    c_pad = _round_up(C, LANE)
    w2_p = jnp.pad(params["w2"], ((0, 0), (0, c_pad - C)))
    b2_p = jnp.pad(params["b2"], ((0, 0), (0, c_pad - C)))

    # ---- Tile sizes: <= ~8 MiB per input buffer (safe for v7x 64 MiB VMEM
    #      with double buffering + the ~2.4 MiB of resident weights). ----
    b_blk = B if B <= 8 else 8
    if t_blk is None:
        budget = 8 * 1024 * 1024
        t_blk = max(8, (budget // (b_blk * D * itemsize)) // 8 * 8)
        t_blk = min(t_blk, _round_up(T, 8))
    else:
        t_blk = min(_round_up(t_blk, 8), _round_up(T, 8))

    # Zero-pad B/T to tile multiples (zeros contribute 0 to the T-sum; the
    # true T is already folded into w1_f, and padded batch rows are sliced).
    b_pad = _round_up(B, b_blk)
    t_pad = _round_up(T, t_blk)
    if (b_pad, t_pad) != (B, T):
        hidden_states = jnp.pad(
            hidden_states, ((0, b_pad - B), (0, t_pad - T), (0, 0)))

    grid = (b_pad // b_blk, t_pad // t_blk)

    # ---- VMEM budget / cost estimate. ----
    in_tile_bytes = b_blk * t_blk * D * itemsize
    resident_bytes = (D * H + H + H * c_pad + c_pad) * 4
    acc_bytes = b_blk * D * 4
    out_bytes = b_blk * c_pad * 4
    vmem_bytes = (2 * in_tile_bytes + 2 * resident_bytes + acc_bytes
                  + 2 * out_bytes + (2 << 20))
    cost = pl.CostEstimate(
        flops=b_pad * t_pad * D + 2 * B * D * H + 2 * B * H * c_pad,
        transcendentals=0,
        bytes_accessed=b_pad * t_pad * D * itemsize + resident_bytes + B * C * 4,
    )

    out = pl.pallas_call(
        gtr_head_kernel,
        out_shape=jax.ShapeDtypeStruct((b_pad, c_pad), jnp.float32),
        grid_spec=pltpu.PrefetchScalarGridSpec(
            num_scalar_prefetch=0,
            grid=grid,
            in_specs=[
                # Streamed, double-buffered hidden-state tiles.
                pl.BlockSpec((b_blk, t_blk, D), lambda b, t: (b, t, 0)),
                # Constant index maps -> weights DMA'd once, VMEM-resident.
                pl.BlockSpec((D, H), lambda b, t: (0, 0)),
                pl.BlockSpec((1, H), lambda b, t: (0, 0)),
                pl.BlockSpec((H, c_pad), lambda b, t: (0, 0)),
                pl.BlockSpec((1, c_pad), lambda b, t: (0, 0)),
            ],
            out_specs=pl.BlockSpec((b_blk, c_pad), lambda b, t: (b, 0)),
            scratch_shapes=[pltpu.VMEM((b_blk, D), jnp.float32)],
        ),
        compiler_params=pltpu.CompilerParams(
            dimension_semantics=("parallel", "arbitrary"),
            vmem_limit_bytes=int(vmem_bytes),
        ),
        cost_estimate=cost,
    )(hidden_states, w1_f, b1_f, w2_p, b2_p)

    return out[:B, :C]


def init_params(key, d_in=1024, d_hidden=512, num_classes=8):
    """Deterministic synthetic parameters matching the PyTorch module shapes."""
    k1, k2, k3, k4 = jax.random.split(key, 4)
    # fc1: PyTorch weight (512, 1024) -> stored transposed (1024, 512)
    w1 = jax.random.normal(k1, (d_in, d_hidden), jnp.float32) * 0.02
    b1 = jax.random.normal(k2, (1, d_hidden), jnp.float32) * 0.01
    # fc2: PyTorch weight (C, 512) -> stored transposed (512, C)
    w2 = jax.random.normal(k3, (d_hidden, num_classes), jnp.float32) * 0.02
    b2 = jax.random.normal(k4, (1, num_classes), jnp.float32) * 0.01
    # BatchNorm1d(512) eval-mode running stats / affine params
    bn_gamma = jnp.ones((1, d_hidden), jnp.float32)
    bn_beta = jnp.zeros((1, d_hidden), jnp.float32)
    bn_mean = jnp.zeros((1, d_hidden), jnp.float32)
    bn_var = jnp.ones((1, d_hidden), jnp.float32)
    return dict(w1=w1, b1=b1, w2=w2, b2=b2,
                bn_gamma=bn_gamma, bn_beta=bn_beta,
                bn_mean=bn_mean, bn_var=bn_var)


def reference_forward(hidden_states, params):
    pooled = jnp.mean(hidden_states.astype(jnp.float32), axis=1)
    z = pooled @ params["w1"] + params["b1"]
    z = (z - params["bn_mean"]) * jax.lax.rsqrt(params["bn_var"] + BN_EPS)
    z = z * params["bn_gamma"] + params["bn_beta"]
    z = jnp.maximum(z, 0.0)
    return z @ params["w2"] + params["b2"]


if __name__ == "__main__":
    key = jax.random.PRNGKey(0)
    k_h, k_p = jax.random.split(key)

    B, T, D, C = 2, 16, 1024, 8
    # Stand-in for hubert_model(x.squeeze(1)).last_hidden_state : [B, T, 1024]
    hidden_states = jax.random.normal(k_h, (B, T, D), jnp.float32)
    params = init_params(k_p, d_in=D, d_hidden=512, num_classes=C)

    # t_blk=8 forces a multi-step T reduction (grid = (1, 2)) even at demo size,
    # exercising the accumulator zero/finalize path.
    logits = gtr_classifier_forward(hidden_states, params, t_blk=8)
    logits = jax.block_until_ready(logits)

    ref = reference_forward(hidden_states, params)
    assert logits.shape == (B, C)
    assert jnp.allclose(logits, ref, atol=1e-4, rtol=1e-4)

    print("KERNEL_OK")
</pallas_src>

<mosaic_0001>
module attributes {stable_mosaic.version = 11 : i64} {
  func.func @gtr_head_kernel(%arg0: i32, %arg1: i32, %arg2: memref<2x8x1024xf32, #tpu.memory_space<vmem>>, %arg3: memref<1024x512xf32, #tpu.memory_space<vmem>>, %arg4: memref<1x512xf32, #tpu.memory_space<vmem>>, %arg5: memref<512x128xf32, #tpu.memory_space<vmem>>, %arg6: memref<1x128xf32, #tpu.memory_space<vmem>>, %arg7: memref<2x128xf32, #tpu.memory_space<vmem>>, %arg8: memref<2x1024xf32, #tpu.memory_space<vmem>>) attributes {dimension_semantics = [#tpu.dimension_semantics<parallel>, #tpu.dimension_semantics<arbitrary>], iteration_bounds = array<i64: 1, 2>, scalar_prefetch = 0 : i64, scratch_operands = 1 : i64, tpu.core_type = #tpu.core_type<tc>, window_params = [{transform_indices = @transform_0, window_bounds = array<i64: 2, 8, 1024>}, {pipeline_mode = #tpu.pipeline_mode<synchronous>, transform_indices = @transform_1, window_bounds = array<i64: 1024, 512>}, {pipeline_mode = #tpu.pipeline_mode<synchronous>, transform_indices = @transform_2, window_bounds = array<i64: 1, 512>}, {pipeline_mode = #tpu.pipeline_mode<synchronous>, transform_indices = @transform_3, window_bounds = array<i64: 512, 128>}, {pipeline_mode = #tpu.pipeline_mode<synchronous>, transform_indices = @transform_4, window_bounds = array<i64: 1, 128>}, {transform_indices = @transform_5, window_bounds = array<i64: 2, 128>}]} {
    %c0_i32 = arith.constant 0 : i32
    %0 = arith.cmpi eq, %arg1, %c0_i32 : i32
    %1 = arith.extui %0 : i1 to i32
    %c0_i32_0 = arith.constant 0 : i32
    %2 = arith.cmpi ne, %1, %c0_i32_0 : i32
    scf.if %2 {
      %cst_8 = arith.constant 0.000000e+00 : f32
      %11 = vector.broadcast %cst_8 : f32 to vector<2x1024xf32>
      %c0_9 = arith.constant 0 : index
      %c0_10 = arith.constant 0 : index
      %12 = vector.load %arg8[%c0_9, %c0_10] : memref<2x1024xf32, #tpu.memory_space<vmem>>, vector<2x1024xf32>
      tpu.vector_store %arg8[%c0_9, %c0_10], %11 {strides = array<i32>} : memref<2x1024xf32, #tpu.memory_space<vmem>>, vector<2x1024xf32>,
    } else {
    }
    %c0 = arith.constant 0 : index
    %c0_1 = arith.constant 0 : index
    %c0_2 = arith.constant 0 : index
    %3 = vector.load %arg2[%c0, %c0_1, %c0_2] : memref<2x8x1024xf32, #tpu.memory_space<vmem>>, vector<2x8x1024xf32>
    %c0_3 = arith.constant 0 : index
    %c0_4 = arith.constant 0 : index
    %4 = vector.load %arg8[%c0_3, %c0_4] : memref<2x1024xf32, #tpu.memory_space<vmem>>, vector<2x1024xf32>
    %cst = arith.constant dense<0.000000e+00> : vector<2x1024xf32>
    %5 = vector.multi_reduction <add>, %3, %cst [1] : vector<2x8x1024xf32> to vector<2x1024xf32>
    %6 = arith.addf %4, %5 : vector<2x1024xf32>
    %c0_5 = arith.constant 0 : index
    %c0_6 = arith.constant 0 : index
    %7 = vector.load %arg8[%c0_5, %c0_6] : memref<2x1024xf32, #tpu.memory_space<vmem>>, vector<2x1024xf32>
    tpu.vector_store %arg8[%c0_5, %c0_6], %6 {strides = array<i32>} : memref<2x1024xf32, #tpu.memory_space<vmem>>, vector<2x1024xf32>,
    %c1_i32 = arith.constant 1 : i32
    %8 = arith.cmpi eq, %arg1, %c1_i32 : i32
    %9 = arith.extui %8 : i1 to i32
    %c0_i32_7 = arith.constant 0 : i32
    %10 = arith.cmpi ne, %9, %c0_i32_7 : i32
    scf.if %10 {
      %c0_8 = arith.constant 0 : index
      %c0_9 = arith.constant 0 : index
      %11 = vector.load %arg8[%c0_8, %c0_9] : memref<2x1024xf32, #tpu.memory_space<vmem>>, vector<2x1024xf32>
      %c0_10 = arith.constant 0 : index
      %c0_11 = arith.constant 0 : index
      %12 = vector.load %arg3[%c0_10, %c0_11] : memref<1024x512xf32, #tpu.memory_space<vmem>>, vector<1024x512xf32>
      %cst_12 = arith.constant dense<0.000000e+00> : vector<2x512xf32>
      %13 = tpu.matmul %11, %12, %cst_12 {dimension_numbers = #tpu.dot_dimension_numbers<[1], [0], [0], [1], [0, 0, 1, 1], [], []>} : vector<2x1024xf32>, vector<1024x512xf32>, vector<2x512xf32> -> vector<2x512xf32>
      %c0_13 = arith.constant 0 : index
      %c0_14 = arith.constant 0 : index
      %14 = vector.load %arg4[%c0_13, %c0_14] : memref<1x512xf32, #tpu.memory_space<vmem>>, vector<1x512xf32>
      %15 = vector.broadcast %14 : vector<1x512xf32> to vector<2x512xf32>
      %16 = arith.addf %13, %15 : vector<2x512xf32>
      %cst_15 = arith.constant 0.000000e+00 : f32
      %17 = vector.broadcast %cst_15 : f32 to vector<2x512xf32>
      %18 = arith.maximumf %16, %17 : vector<2x512xf32>
      %c0_16 = arith.constant 0 : index
      %c0_17 = arith.constant 0 : index
      %19 = vector.load %arg5[%c0_16, %c0_17] : memref<512x128xf32, #tpu.memory_space<vmem>>, vector<512x128xf32>
      %cst_18 = arith.constant dense<0.000000e+00> : vector<2x128xf32>
      %20 = tpu.matmul %18, %19, %cst_18 {dimension_numbers = #tpu.dot_dimension_numbers<[1], [0], [0], [1], [0, 0, 1, 1], [], []>} : vector<2x512xf32>, vector<512x128xf32>, vector<2x128xf32> -> vector<2x128xf32>
      %c0_19 = arith.constant 0 : index
      %c0_20 = arith.constant 0 : index
      %21 = vector.load %arg6[%c0_19, %c0_20] : memref<1x128xf32, #tpu.memory_space<vmem>>, vector<1x128xf32>
      %22 = vector.broadcast %21 : vector<1x128xf32> to vector<2x128xf32>
      %23 = arith.addf %20, %22 : vector<2x128xf32>
      %c0_21 = arith.constant 0 : index
      %c0_22 = arith.constant 0 : index
      %24 = vector.load %arg7[%c0_21, %c0_22] : memref<2x128xf32, #tpu.memory_space<vmem>>, vector<2x128xf32>
      tpu.vector_store %arg7[%c0_21, %c0_22], %23 {strides = array<i32>} : memref<2x128xf32, #tpu.memory_space<vmem>>, vector<2x128xf32>,
    } else {
    }
    return
  }
  func.func @transform_0(%arg0: i32, %arg1: i32) -> (i32, i32, i32) {
    %c0_i32 = arith.constant 0 : i32
    %c0_i32_0 = arith.constant 0 : i32
    return %arg0, %arg1, %c0_i32 : i32, i32, i32
  }
  func.func @transform_1(%arg0: i32, %arg1: i32) -> (i32, i32) {
    %c0_i32 = arith.constant 0 : i32
    %c0_i32_0 = arith.constant 0 : i32
    %c0_i32_1 = arith.constant 0 : i32
    return %c0_i32, %c0_i32_0 : i32, i32
  }
  func.func @transform_2(%arg0: i32, %arg1: i32) -> (i32, i32) {
    %c0_i32 = arith.constant 0 : i32
    %c0_i32_0 = arith.constant 0 : i32
    %c0_i32_1 = arith.constant 0 : i32
    return %c0_i32, %c0_i32_0 : i32, i32
  }
  func.func @transform_3(%arg0: i32, %arg1: i32) -> (i32, i32) {
    %c0_i32 = arith.constant 0 : i32
    %c0_i32_0 = arith.constant 0 : i32
    %c0_i32_1 = arith.constant 0 : i32
    return %c0_i32, %c0_i32_0 : i32, i32
  }
  func.func @transform_4(%arg0: i32, %arg1: i32) -> (i32, i32) {
    %c0_i32 = arith.constant 0 : i32
    %c0_i32_0 = arith.constant 0 : i32
    %c0_i32_1 = arith.constant 0 : i32
    return %c0_i32, %c0_i32_0 : i32, i32
  }
  func.func @transform_5(%arg0: i32, %arg1: i32) -> (i32, i32) {
    %c0_i32 = arith.constant 0 : i32
    %c0_i32_0 = arith.constant 0 : i32
    return %arg0, %c0_i32 : i32, i32
  }
}

</mosaic_0001>

<bundles_post_ra>
// kernel: tpu_custom_call.1
= control target key start
LH: loop header
LB: loop body
LE: loop exit
PB: predicated region body
PF: predicated region fallthrough
CT: control target
= control target key end

     0   :  { %10 = vsyncpa [#allocation4], 0  ;;  %s2662_s0 = inlined_call_operand.hbm [shape: f32[2,16,1024], index: 0, kind: input, shape index: {}]   ;;  %s2663_s1 = inlined_call_operand.hbm [shape: f32[1024,512], index: 1, kind: input, shape index: {}]   ;;  %s2664_s2 = inlined_call_operand.hbm [shape: f32[1,512], index: 2, kind: input, shape index: {}]   ;;  %s2665_s3 = inlined_call_operand.hbm [shape: f32[512,128], index: 3, kind: input, shape index: {}]   ;;  %s2666_s4 = inlined_call_operand.hbm [shape: f32[1,128], index: 4, kind: input, shape index: {}]   ;;  %s2667_s5 = inlined_call_operand.hbm [shape: f32[2,128], index: 5, kind: output, shape index: {}]  }
   0x1   :  { %12 = vsyncpa [#allocation4 + $0x1], 0 }
   0x2   :  { %13 = vsyncpa [#allocation7], 0 }
   0x3   :  { %14 = vsyncpa [#allocation10], 0 }
   0x4   :  { %15 = vsyncpa [#allocation5], 0  ;;  %s2390_s18 = smov 0   ;;  %s2392_s19 = smov 0  }
   0x5   :  { %s2394_s20 = smov 0   ;;  %s2396_s21 = smov 0  }
   0x6   :  { %s2398_s22 = smov 0   ;;  %s2400_s23 = smov 0  }
   0x7 LB: > { %s2668_s24 = sadd.s32 4294967295, %s2345_s23   ;;  %p55_p0 = scmp.ne.s32.totalorder %s2329_s19, %s2325_s18  ;;  %s2345_s23 = sphi %s2400_s23, %s21_s23   ;;  %s2341_s22 = sphi %s2398_s22, %s2679_s22   ;;  %s2337_s21 = sphi %s2396_s21, %s2678_s21   ;;  %s2333_s20 = sphi %s2394_s20, %s2677_s20   ;;  %s2329_s19 = sphi %s2392_s19, %s2676_s19   ;;  %s2325_s18 = sphi %s2390_s18, %s2675_s18  }
   0x8   : > { %p2422_p1 = scmp.eq.s32.totalorder %s2668_s24, 0  ;;  %p1963_p2 = scmp.ge.s32.totalorder %s2345_s23, 1 }
   0x9   : > { %p176_p3 = scmp.lt.s32.totalorder %s2345_s23, 3  ;;  %s187_s29 = sshll.u32 %s2663_s1, 4  ;;  %s188_s29 = int_to_ptr.hbm [resolvable:$true] %s187_s29 }
   0xa   : > { %p2430_p4 = por %p2422_p1, %p55_p0  ;;  %s2347_s6 = smov [#allocation6]  }
   0xb   : > { %p2437_p5 = pnand %p1963_p2, %p176_p3  ;;  %s189_s7 = sshll.u32 %s2347_s6, 4  ;;  %s190_s7 = int_to_ptr.vmem [resolvable:$true] %s189_s7 }
   0xc   : > { %s213_s11 = sshll.u32 %s2665_s3, 4  ;;  %s2348_s12 = smov 512   ;;  %s214_s11 = int_to_ptr.hbm [resolvable:$true] %s213_s11 }
   0xd   : > { %p2007_p6 = pneg %p2437_p5  ;;  %s2349_s13 = smov 32  }
   0xe   : > { %s2350_s14 = smov [#allocation9]   ;;  %s2351_s16 = smov 128  }
   0xf   : > { %p2445_p7 = pnand %p2007_p6, %p2422_p1  ;;  %s215_s15 = sshll.u32 %s2350_s14, 4  ;;  %s216_s15 = int_to_ptr.vmem [resolvable:$true] %s215_s15 }
  0x10   : > { %s2352_s17 = smov 8   ;;  %s202_s28 = sshll.u32 %s2664_s2, 4  ;;  %s203_s28 = int_to_ptr.hbm [resolvable:$true] %s202_s28 }
  0x11   : > { %2010 = dma.hbm_to_vmem [thread:$0]  (!%p2445_p7), %s188_s29, 65536, %s190_s7, [#allocation7], %s2348_s12, %s2348_s12, %s2349_s13  }
  0x12   : > { %2016 = dma.hbm_to_vmem [thread:$0]  (!%p2445_p7), %s214_s11, 8192, %s216_s15, [#allocation10], %s2351_s16, %s2351_s16, %s2352_s17  }
  0x13   : > { %s2353_s29 = smov [#allocation8]   ;;  %s228_s10 = sshll.u32 %s2666_s4, 4  ;;  %s229_s10 = int_to_ptr.hbm [resolvable:$true] %s228_s10 }
  0x14   : > { %s204_s6 = sshll.u32 %s2353_s29, 4  ;;  %s2354_s11 = smov [#allocation11]   ;;  %s205_s6 = int_to_ptr.vmem [resolvable:$true] %s204_s6 }
  0x15   : > { %2013 = dma.hbm_to_vmem [thread:$0]  (!%p2445_p7), %s203_s28, 64, %s205_s6, [#allocation7]  }
  0x16   : > { %s230_s12 = sshll.u32 %s2354_s11, 4  ;;  %s30_s13 = sadd.s32 1, %s2341_s22  ;;  %s231_s12 = int_to_ptr.vmem [resolvable:$true] %s230_s12 }
  0x17   : > { %2019 = dma.hbm_to_vmem [thread:$0]  (!%p2445_p7), %s229_s10, 16, %s231_s12, [#allocation10]  }
  0x18   : > { %s42_s14 = sadd.s32 1, %s2333_s20  ;;  %p31_p8 = scmp.ge.s32.totalorder %s30_s13, 2 }
  0x19   : > { %p49_p9 = scmp.ne.s32.totalorder %s2333_s20, %s2329_s19  ;;  %p50_p10 = scmp.eq.s32.totalorder %s2345_s23, 0 }
  0x1a   : > { %p2028_p11 = scmp.lt.s32.totalorder %s2345_s23, 2  ;;  %s2681_s13 = smov (%p31_p8, %s30_s13), 0 }
  0x1b   : > { %p2474_p12 = por %p50_p10, %p49_p9  ;;  %s241_s16 = sand.u32 1, %s2333_s20  }
  0x1c   : > { %s38_s17 = ssub.s32 %s2341_s22, %s2681_s13  ;;  %s1969_s8 = sshll.u32 %s241_s16, 7 }
  0x1d   : > { %p40_p13 = scmp.eq.s32.totalorder %s38_s17, 0  ;;  %s1984_s18 = sshll.u32 %s2341_s22, 6 }
  0x1e   : > { %s253_s6 = scalar_lea.hbm %s2662_s0, %s1984_s18  ;;  %s245_s7 = scalar_lea.vmem [#allocation3], %s1969_s8 }
  0x1f   : > { %s2483_s27 = scalar_select %p40_p13, %s2333_s20, %s42_s14  }
  0x20   : > { %s256_s9 = sshll.u32 %s245_s7, 4  ;;  %s254_s10 = sshll.u32 %s253_s6, 4  ;;  %s257_s9 = int_to_ptr.vmem [resolvable:$true] %s256_s9  ;;  %s255_s10 = int_to_ptr.hbm [resolvable:$true] %s254_s10 }
  0x21   : > { %p2021_p0 = pnand %p2028_p11, %p2474_p12  ;;  %s242_s11 = scalar_lea.sflag [#allocation4], %s241_s16 }
  0x22   : > { %s2355_s12 = smov 2048   ;;  %s2356_s24 = smov 1024  }
  0x23   : > { %s2357_s17 = smov 64   ;;  %268 = sbr.rel (%p2437_p5) target bundleno = 745 (0x2e9), region = 40 }
  0x24   : > { %2023 = dma.hbm_to_vmem [thread:$0]  (!%p2021_p0), %s255_s10, 2048, %s257_s9, %s242_s11, %s2355_s12, %s2356_s24, %s2357_s17  }
  0x25   : > { %s270_s14 = sand.u32 (!%p2437_p5), 1, %s2329_s19  }
  0x26   : > { %s1973_s18 = sshll.u32 (!%p2437_p5), %s270_s14, 7  ;;  %s271_s8 = scalar_lea.sflag (!%p2437_p5), [#allocation4], %s270_s14 }
  0x27   : > { %s2495_s28 = scalar_lea.vmem (!%p2437_p5), [#allocation3], %s1973_s18 }
  0x28   : > { %2308 = dma.done.wait (%p2430_p4), %s271_s8, 2048  }
  0x29   : > { %2310 = vsyncadd (%p2430_p4), %s271_s8, 4294965248 }
  0x2a   : > { %2312 = dma.done.wait (%p2422_p1), [#allocation7], 65600  }
  0x2b   : > { %2314 = vsyncadd (%p2422_p1), [#allocation7], 4294901696 }
  0x2c   : > { %2316 = dma.done.wait (%p2422_p1), [#allocation10], 8208  }
  0x2d   : > { %2318 = vsyncadd (%p2422_p1), [#allocation10], 4294959088  ;;  %p1978_p2 = scmp.ne.s32.totalorder %s2337_s21, 0 }
  0x2f   : > { %321 = sbr.rel (%p1978_p2) target bundleno = 55 (0x37), region = 64 }
  0x34   : > { %v2358_v0 = vmov 0.0  }
  0x35   : > { %322 = vst [vmem:[#allocation2] sm:$0xff] %v2358_v0 }
  0x36   : > { %323 = vst [vmem:[#allocation2 + $0x8] sm:$0xff] %v2358_v0 }
  0x37 PF: > { %v324_v1 = vld [vmem:[%s2495_s28] sm:$0xff]  ;;  %v325_v2 = vld [vmem:[%s2495_s28 + $0x8] sm:$0xff]  ;;  %v326_v3 = vld [vmem:[%s2495_s28 + $0x10] sm:$0xff]  ;;  %vm466_vm0 = vcmask 1041408   ;;  %vm468_vm1 = vcmask 1045508   ;;  %vm470_vm2 = vcmask 1043456  }
  0x38   : > { %v327_v4 = vld [vmem:[%s2495_s28 + $0x18] sm:$0xff]  ;;  %v328_v5 = vld [vmem:[%s2495_s28 + $0x20] sm:$0xff]  ;;  %v329_v6 = vld [vmem:[%s2495_s28 + $0x28] sm:$0xff]  ;;  %v342_v7 = vrot.slane %v324_v1, 4  ;;  %v348_v8 = vrot.slane %v325_v2, 4  ;;  %v354_v9 = vrot.slane %v326_v3, 4 }
  0x39   : > { %v330_v10 = vld [vmem:[%s2495_s28 + $0x30] sm:$0xff]  ;;  %v331_v11 = vld [vmem:[%s2495_s28 + $0x38] sm:$0xff]  ;;  %v360_v12 = vrot.slane %v327_v4, 4  ;;  %v366_v13 = vrot.slane %v328_v5, 4  ;;  %v372_v14 = vrot.slane %v329_v6, 4  ;;  %v332_v43 = vld [vmem:[%s2495_s28 + $0x40] sm:$0xff] }
  0x3a   : > { %v343_v15 = vadd.f32 %v342_v7, %v324_v1  ;;  %v349_v16 = vadd.f32 %v348_v8, %v325_v2  ;;  %v355_v17 = vadd.f32 %v354_v9, %v326_v3  ;;  %v378_v18 = vrot.slane %v330_v10, 4  ;;  %v333_v44 = vld [vmem:[%s2495_s28 + $0x48] sm:$0xff]  ;;  %v334_v45 = vld [vmem:[%s2495_s28 + $0x50] sm:$0xff]  ;;  %v335_v50 = vld [vmem:[%s2495_s28 + $0x58] sm:$0xff]  ;;  %p1979_p1 = scmp.ne.s32.totalorder %s2337_s21, 1 }
  0x3b   : > { %v361_v19 = vadd.f32 %v360_v12, %v327_v4  ;;  %v367_v20 = vadd.f32 %v366_v13, %v328_v5  ;;  %v373_v21 = vadd.f32 %v372_v14, %v329_v6  ;;  %v384_v22 = vrot.slane %v331_v11, 4  ;;  %v336_v51 = vld [vmem:[%s2495_s28 + $0x60] sm:$0xff]  ;;  %v337_v52 = vld [vmem:[%s2495_s28 + $0x68] sm:$0xff]  ;;  %v338_v57 = vld [vmem:[%s2495_s28 + $0x70] sm:$0xff] }
  0x3c   : > { %v344_v23 = vrot.slane %v343_v15, 2  ;;  %v350_v24 = vrot.slane %v349_v16, 2  ;;  %v356_v25 = vrot.slane %v355_v17, 2  ;;  %v379_v26 = vadd.f32 %v378_v18, %v330_v10  ;;  %v339_v62 = vld [vmem:[%s2495_s28 + $0x78] sm:$0xff] }
  0x3d   : > { %v362_v27 = vrot.slane %v361_v19, 2  ;;  %v368_v28 = vrot.slane %v367_v20, 2  ;;  %v374_v29 = vrot.slane %v373_v21, 2  ;;  %v385_v30 = vadd.f32 %v384_v22, %v331_v11 }
  0x3e   : > { %v345_v31 = vadd.f32 %v344_v23, %v343_v15  ;;  %v351_v32 = vadd.f32 %v350_v24, %v349_v16  ;;  %v357_v33 = vadd.f32 %v356_v25, %v355_v17  ;;  %v380_v34 = vrot.slane %v379_v26, 2 }
  0x3f   : > { %v363_v35 = vadd.f32 %v362_v27, %v361_v19  ;;  %v369_v36 = vadd.f32 %v368_v28, %v367_v20  ;;  %v375_v37 = vadd.f32 %v374_v29, %v373_v21  ;;  %v386_v38 = vrot.slane %v385_v30, 2 }
  0x40   : > { %v346_v39 = vrot.slane %v345_v31, 1  ;;  %v352_v40 = vrot.slane %v351_v32, 1  ;;  %v358_v41 = vrot.slane %v357_v33, 1  ;;  %v381_v42 = vadd.f32 %v380_v34, %v379_v26 }
  0x41   : > { %v364_v46 = vrot.slane %v363_v35, 1  ;;  %v370_v47 = vrot.slane %v369_v36, 1  ;;  %v376_v48 = vrot.slane %v375_v37, 1  ;;  %v387_v49 = vadd.f32 %v386_v38, %v385_v30 }
  0x42   : > { %v2524_v53 = vadd.f32 %v346_v39, %v345_v31  ;;  %v2526_v54 = vadd.f32 %v352_v40, %v351_v32  ;;  %v2528_v55 = vadd.f32 %v358_v41, %v357_v33  ;;  %v382_v56 = vrot.slane %v381_v42, 1 }
  0x43   : > { %v2531_v58 = vadd.f32 %v364_v46, %v363_v35  ;;  %v2533_v59 = vadd.f32 %v370_v47, %v369_v36  ;;  %v2535_v60 = vadd.f32 %v376_v48, %v375_v37  ;;  %v388_v61 = vrot.slane %v387_v49, 1 }
  0x44   : > { %v2538_v63 = vadd.f32 %v382_v56, %v381_v42  ;;  %v390_v0 = vrot.slane %v332_v43, 4  ;;  %v396_v1 = vrot.slane %v333_v44, 4  ;;  %v402_v2 = vrot.slane %v334_v45, 4 }
  0x45   : > { %v2540_v3 = vadd.f32 %v388_v61, %v387_v49  ;;  %v408_v4 = vrot.slane %v335_v50, 4  ;;  %v414_v5 = vrot.slane %v336_v51, 4  ;;  %v420_v6 = vrot.slane %v337_v52, 4 }
  0x46   : > { %v391_v7 = vadd.f32 %v390_v0, %v332_v43  ;;  %v397_v8 = vadd.f32 %v396_v1, %v333_v44  ;;  %v403_v9 = vadd.f32 %v402_v2, %v334_v45  ;;  %v426_v10 = vrot.slane %v338_v57, 4 }
  0x47   : > { %v409_v11 = vadd.f32 %v408_v4, %v335_v50  ;;  %v415_v12 = vadd.f32 %v414_v5, %v336_v51  ;;  %v421_v13 = vadd.f32 %v420_v6, %v337_v52  ;;  %v432_v14 = vrot.slane %v339_v62, 4 }
  0x48   : > { %v392_v15 = vrot.slane %v391_v7, 2  ;;  %v398_v16 = vrot.slane %v397_v8, 2  ;;  %v404_v17 = vrot.slane %v403_v9, 2  ;;  %v427_v18 = vadd.f32 %v426_v10, %v338_v57 }
  0x49   : > { %v410_v19 = vrot.slane %v409_v11, 2  ;;  %v416_v20 = vrot.slane %v415_v12, 2  ;;  %v422_v21 = vrot.slane %v421_v13, 2  ;;  %v433_v22 = vadd.f32 %v432_v14, %v339_v62  ;;  %v341_v14 = vld [vmem:[#allocation2 + $0x8] sm:$0xff] }
  0x4a   : > { %v393_v23 = vadd.f32 %v392_v15, %v391_v7  ;;  %v399_v24 = vadd.f32 %v398_v16, %v397_v8  ;;  %v405_v25 = vadd.f32 %v404_v17, %v403_v9  ;;  %v428_v26 = vrot.slane %v427_v18, 2 }
  0x4b   : > { %v411_v27 = vadd.f32 %v410_v19, %v409_v11  ;;  %v417_v28 = vadd.f32 %v416_v20, %v415_v12  ;;  %v423_v29 = vadd.f32 %v422_v21, %v421_v13  ;;  %v434_v30 = vrot.slane %v433_v22, 2  ;;  %v340_v13 = vld [vmem:[#allocation2] sm:$0xff] }
  0x4c   : > { %v394_v31 = vrot.slane %v393_v23, 1  ;;  %v400_v32 = vrot.slane %v399_v24, 1  ;;  %v406_v33 = vrot.slane %v405_v25, 1  ;;  %v429_v34 = vadd.f32 %v428_v26, %v427_v18 }
  0x4d   : > { %v412_v35 = vrot.slane %v411_v27, 1  ;;  %v418_v36 = vrot.slane %v417_v28, 1  ;;  %v424_v37 = vrot.slane %v423_v29, 1  ;;  %v435_v38 = vadd.f32 %v434_v30, %v433_v22 }
  0x4e   : > { %v395_v39 = vadd.f32 %v394_v31, %v393_v23  ;;  %v401_v40 = vadd.f32 %v400_v32, %v399_v24  ;;  %v407_v41 = vadd.f32 %v406_v33, %v405_v25  ;;  %v430_v42 = vrot.slane %v429_v34, 1 }
  0x4f   : > { %v413_v43 = vadd.f32 %v412_v35, %v411_v27  ;;  %v419_v44 = vadd.f32 %v418_v36, %v417_v28  ;;  %v425_v45 = vadd.f32 %v424_v37, %v423_v29  ;;  %v436_v46 = vrot.slane %v435_v38, 1 }
  0x50   : > { %v431_v47 = vadd.f32 %v430_v42, %v429_v34  ;;  %v454_v48 = vrot.slane %v2526_v54, 6  ;;  %v455_v49 = vrot.slane %v2528_v55, 4  ;;  %v456_v50 = vrot.slane %v2531_v58, 2 }
  0x51   : > { %v437_v51 = vadd.f32 %v436_v46, %v435_v38  ;;  %v457_v52 = vrot.slane %v2535_v60, 6  ;;  %v458_v56 = vrot.slane %v2538_v63, 4  ;;  %v459_v57 = vrot.slane %v2540_v3, 2 }
  0x52   : > { %v460_v61 = vrot.slane %v401_v40, 6  ;;  %v461_v62 = vrot.slane %v407_v41, 4  ;;  %v462_v0 = vrot.slane %v413_v43, 2  ;;  %v463_v1 = vrot.slane %v425_v45, 6 }
  0x53   : > { %v464_v2 = vrot.slane %v431_v47, 4  ;;  %v465_v4 = vrot.slane %v437_v51, 2  ;;  %v467_v54 = vsel %vm466_vm0, %v2524_v53, %v454_v48  ;;  %v469_v55 = vsel %vm468_vm1, %v455_v49, %v456_v50 }
  0x54   : > { %v472_v58 = vsel %vm466_vm0, %v2533_v59, %v457_v52  ;;  %v473_v60 = vsel %vm468_vm1, %v458_v56, %v459_v57  ;;  %v475_v63 = vsel %vm466_vm0, %v395_v39, %v460_v61  ;;  %v471_v3 = vsel %vm470_vm2, %v467_v54, %v469_v55 }
  0x55   : > { %v476_v5 = vsel %vm468_vm1, %v461_v62, %v462_v0  ;;  %v478_v6 = vsel %vm466_vm0, %v419_v44, %v463_v1  ;;  %v479_v7 = vsel %vm468_vm1, %v464_v2, %v465_v4  ;;  %v474_v8 = vsel %vm470_vm2, %v472_v58, %v473_v60 }
  0x56   : > { %v477_v53 = vsel %vm470_vm2, %v475_v63, %v476_v5  ;;  %v480_v9 = vsel %vm470_vm2, %v478_v6, %v479_v7  ;;  %vm486_vm3 = vcmask 1041409   ;;  %vm488_vm4 = vcmask 1043459  }
  0x57   : > { %v485_v59 = vrot.slane %v477_v53, 7  ;;  %v496_v10 = vrot.slane %v480_v9, 7  ;;  %vm490_vm5 = vcmask 1045509   ;;  %vm492_vm6 = vcmask 1047559  }
  0x59   : > { %v487_v11 = vsel %vm486_vm3, %v485_v59, %v471_v3  ;;  %v497_v12 = vsel %vm486_vm3, %v496_v10, %v474_v8 }
  0x5a   : > { %v489_v15 = vsel %vm488_vm4, %v485_v59, %v487_v11  ;;  %v498_v16 = vsel %vm488_vm4, %v496_v10, %v497_v12 }
  0x5b   : > { %v491_v17 = vsel %vm490_vm5, %v485_v59, %v489_v15  ;;  %v499_v18 = vsel %vm490_vm5, %v496_v10, %v498_v16 }
  0x5c   : > { %v493_v19 = vsel %vm492_vm6, %v485_v59, %v491_v17  ;;  %v500_v20 = vsel %vm492_vm6, %v496_v10, %v499_v18  ;;  %510 = sbr.rel (%p1979_p1) target bundleno = 739 (0x2e3), region = 68 }
  0x5d   : > { %v503_v21 = vadd.f32 %v493_v19, %v340_v13  ;;  %v504_v22 = vadd.f32 %v500_v20, %v341_v14 }
  0x5f   : > { %505 = vst [vmem:[#allocation2] sm:$0xff] %v503_v21 }
  0x60   : > { %506 = vst [vmem:[#allocation2 + $0x8] sm:$0xff] %v504_v22 }
  0x61   : > { %v573_v23 = vld [vmem:[#allocation6 + $0x1e0] sm:$0xff] }
  0x62   : > { %v637_v24 = vld [vmem:[#allocation6 + $0x3e0] sm:$0xff]  ;;  %1056 = vmatpush.msra.mxu0 %v573_v23 }
  0x63   : > { %v701_v25 = vld [vmem:[#allocation6 + $0x5e0] sm:$0xff]  ;;  %1076 = vmatpush.msra.mxu1 %v637_v24 }
  0x64   : > { %v569_v26 = vld [vmem:[#allocation6 + $0x1c0] sm:$0xff]  ;;  %1096 = vmatpush.msra.mxu2 %v701_v25 }
  0x65   : > { %v633_v27 = vld [vmem:[#allocation6 + $0x3c0] sm:$0xff]  ;;  %1057 = vmatpush.msra.mxu0 %v569_v26 }
  0x66   : > { %v697_v28 = vld [vmem:[#allocation6 + $0x5c0] sm:$0xff]  ;;  %1077 = vmatpush.msra.mxu1 %v633_v27 }
  0x67   : > { %v765_v29 = vld [vmem:[#allocation6 + $0x7e0] sm:$0xff]  ;;  %1097 = vmatpush.msra.mxu2 %v697_v28 }
  0x68   : > { %v565_v30 = vld [vmem:[#allocation6 + $0x1a0] sm:$0xff]  ;;  %1116 = vmatpush.msra.mxu3 %v765_v29 }
  0x69   : > { %v629_v31 = vld [vmem:[#allocation6 + $0x3a0] sm:$0xff]  ;;  %1058 = vmatpush.msra.mxu0 %v565_v30 }
  0x6a   : > { %v693_v32 = vld [vmem:[#allocation6 + $0x5a0] sm:$0xff]  ;;  %1078 = vmatpush.msra.mxu1 %v629_v31 }
  0x6b   : > { %v761_v33 = vld [vmem:[#allocation6 + $0x7c0] sm:$0xff]  ;;  %1098 = vmatpush.msra.mxu2 %v693_v32 }
  0x6c   : > { %v561_v34 = vld [vmem:[#allocation6 + $0x180] sm:$0xff]  ;;  %1117 = vmatpush.msra.mxu3 %v761_v33 }
  0x6d   : > { %v625_v35 = vld [vmem:[#allocation6 + $0x380] sm:$0xff]  ;;  %1059 = vmatpush.msra.mxu0 %v561_v34 }
  0x6e   : > { %v689_v36 = vld [vmem:[#allocation6 + $0x580] sm:$0xff]  ;;  %1079 = vmatpush.msra.mxu1 %v625_v35 }
  0x6f   : > { %v757_v37 = vld [vmem:[#allocation6 + $0x7a0] sm:$0xff]  ;;  %1099 = vmatpush.msra.mxu2 %v689_v36 }
  0x70   : > { %v557_v38 = vld [vmem:[#allocation6 + $0x160] sm:$0xff]  ;;  %1118 = vmatpush.msra.mxu3 %v757_v37 }
  0x71   : > { %v621_v39 = vld [vmem:[#allocation6 + $0x360] sm:$0xff]  ;;  %1060 = vmatpush.msra.mxu0 %v557_v38 }
  0x72   : > { %v685_v40 = vld [vmem:[#allocation6 + $0x560] sm:$0xff]  ;;  %1080 = vmatpush.msra.mxu1 %v621_v39 }
  0x73   : > { %v753_v41 = vld [vmem:[#allocation6 + $0x780] sm:$0xff]  ;;  %1100 = vmatpush.msra.mxu2 %v685_v40 }
  0x74   : > { %v553_v42 = vld [vmem:[#allocation6 + $0x140] sm:$0xff]  ;;  %1119 = vmatpush.msra.mxu3 %v753_v41 }
  0x75   : > { %v617_v43 = vld [vmem:[#allocation6 + $0x340] sm:$0xff]  ;;  %1061 = vmatpush.msra.mxu0 %v553_v42 }
  0x76   : > { %v681_v44 = vld [vmem:[#allocation6 + $0x540] sm:$0xff]  ;;  %1081 = vmatpush.msra.mxu1 %v617_v43 }
  0x77   : > { %v749_v45 = vld [vmem:[#allocation6 + $0x760] sm:$0xff]  ;;  %1101 = vmatpush.msra.mxu2 %v681_v44 }
  0x78   : > { %v549_v46 = vld [vmem:[#allocation6 + $0x120] sm:$0xff]  ;;  %1120 = vmatpush.msra.mxu3 %v749_v45 }
  0x79   : > { %v613_v47 = vld [vmem:[#allocation6 + $0x320] sm:$0xff]  ;;  %1062 = vmatpush.msra.mxu0 %v549_v46 }
  0x7a   : > { %v677_v48 = vld [vmem:[#allocation6 + $0x520] sm:$0xff]  ;;  %1082 = vmatpush.msra.mxu1 %v613_v47 }
  0x7b   : > { %v745_v49 = vld [vmem:[#allocation6 + $0x740] sm:$0xff]  ;;  %1102 = vmatpush.msra.mxu2 %v677_v48  ;;  %v511_v48 = vld [vmem:[#allocation2] sm:$0xff] }
  0x7c   : > { %v545_v50 = vld [vmem:[#allocation6 + $0x100] sm:$0xff]  ;;  %1121 = vmatpush.msra.mxu3 %v745_v49  ;;  %1037 = vst [vmem:[#allocation1] ss:$4 sm:$0xff] %v511_v48  ;;  %v754_v48 = vld [vmem:[#allocation6 + $0x788] sm:$0xff] }
  0x7d   : > { %v609_v51 = vld [vmem:[#allocation6 + $0x300] sm:$0xff]  ;;  %1063 = vmatpush.msra.mxu0 %v545_v50 }
  0x7e   : > { %v673_v52 = vld [vmem:[#allocation6 + $0x500] sm:$0xff]  ;;  %1083 = vmatpush.msra.mxu1 %v609_v51 }
  0x7f   : > { %v741_v56 = vld [vmem:[#allocation6 + $0x720] sm:$0xff]  ;;  %1103 = vmatpush.msra.mxu2 %v673_v52 }
  0x80   : > { %v541_v57 = vld [vmem:[#allocation6 + $0xe0] sm:$0xff]  ;;  %1122 = vmatpush.msra.mxu3 %v741_v56 }
  0x81   : > { %v605_v61 = vld [vmem:[#allocation6 + $0x2e0] sm:$0xff]  ;;  %1064 = vmatpush.msra.mxu0 %v541_v57 }
  0x82   : > { %v669_v62 = vld [vmem:[#allocation6 + $0x4e0] sm:$0xff]  ;;  %1084 = vmatpush.msra.mxu1 %v605_v61 }
  0x83   : > { %v737_v0 = vld [vmem:[#allocation6 + $0x700] sm:$0xff]  ;;  %1104 = vmatpush.msra.mxu2 %v669_v62 }
  0x84   : > { %v537_v1 = vld [vmem:[#allocation6 + $0xc0] sm:$0xff]  ;;  %1123 = vmatpush.msra.mxu3 %v737_v0 }
  0x85   : > { %v601_v2 = vld [vmem:[#allocation6 + $0x2c0] sm:$0xff]  ;;  %1065 = vmatpush.msra.mxu0 %v537_v1 }
  0x86   : > { %v665_v4 = vld [vmem:[#allocation6 + $0x4c0] sm:$0xff]  ;;  %1085 = vmatpush.msra.mxu1 %v601_v2 }
  0x87   : > { %v733_v54 = vld [vmem:[#allocation6 + $0x6e0] sm:$0xff]  ;;  %1105 = vmatpush.msra.mxu2 %v665_v4 }
  0x88   : > { %v533_v55 = vld [vmem:[#allocation6 + $0xa0] sm:$0xff]  ;;  %1124 = vmatpush.msra.mxu3 %v733_v54  ;;  %v512_v54 = vld [vmem:[#allocation2 + $0x8] sm:$0xff] }
  0x89   : > { %v597_v58 = vld [vmem:[#allocation6 + $0x2a0] sm:$0xff]  ;;  %1066 = vmatpush.msra.mxu0 %v533_v55  ;;  %1039 = vst [vmem:[#allocation1 + $0x20] ss:$4 sm:$0xff] %v512_v54  ;;  %v610_v54 = vld [vmem:[#allocation6 + $0x308] sm:$0xff] }
  0x8a   : > { %v661_v60 = vld [vmem:[#allocation6 + $0x4a0] sm:$0xff]  ;;  %1086 = vmatpush.msra.mxu1 %v597_v58 }
  0x8b   : > { %v729_v63 = vld [vmem:[#allocation6 + $0x6c0] sm:$0xff]  ;;  %1106 = vmatpush.msra.mxu2 %v661_v60 }
  0x8c   : > { %v529_v3 = vld [vmem:[#allocation6 + $0x80] sm:$0xff]  ;;  %1125 = vmatpush.msra.mxu3 %v729_v63 }
  0x8d   : > { %v593_v5 = vld [vmem:[#allocation6 + $0x280] sm:$0xff]  ;;  %1067 = vmatpush.msra.mxu0 %v529_v3 }
  0x8e   : > { %v657_v6 = vld [vmem:[#allocation6 + $0x480] sm:$0xff]  ;;  %1087 = vmatpush.msra.mxu1 %v593_v5 }
  0x8f   : > { %v725_v7 = vld [vmem:[#allocation6 + $0x6a0] sm:$0xff]  ;;  %1107 = vmatpush.msra.mxu2 %v657_v6 }
  0x90   : > { %v525_v8 = vld [vmem:[#allocation6 + $0x60] sm:$0xff]  ;;  %1126 = vmatpush.msra.mxu3 %v725_v7 }
  0x91   : > { %v589_v53 = vld [vmem:[#allocation6 + $0x260] sm:$0xff]  ;;  %1068 = vmatpush.msra.mxu0 %v525_v8 }
  0x92   : > { %v653_v9 = vld [vmem:[#allocation6 + $0x460] sm:$0xff]  ;;  %1088 = vmatpush.msra.mxu1 %v589_v53 }
  0x93   : > { %v721_v59 = vld [vmem:[#allocation6 + $0x680] sm:$0xff]  ;;  %1108 = vmatpush.msra.mxu2 %v653_v9 }
  0x94   : > { %v521_v10 = vld [vmem:[#allocation6 + $0x40] sm:$0xff]  ;;  %1127 = vmatpush.msra.mxu3 %v721_v59 }
  0x95   : > { %v585_v11 = vld [vmem:[#allocation6 + $0x240] sm:$0xff]  ;;  %1069 = vmatpush.msra.mxu0 %v521_v10 }
  0x96   : > { %v649_v12 = vld [vmem:[#allocation6 + $0x440] sm:$0xff]  ;;  %1089 = vmatpush.msra.mxu1 %v585_v11 }
  0x97   : > { %v717_v13 = vld [vmem:[#allocation6 + $0x660] sm:$0xff]  ;;  %1109 = vmatpush.msra.mxu2 %v649_v12 }
  0x98   : > { %v517_v14 = vld [vmem:[#allocation6 + $0x20] sm:$0xff]  ;;  %1128 = vmatpush.msra.mxu3 %v717_v13 }
  0x99   : > { %v581_v15 = vld [vmem:[#allocation6 + $0x220] sm:$0xff]  ;;  %1070 = vmatpush.msra.mxu0 %v517_v14 }
  0x9a   : > { %v645_v16 = vld [vmem:[#allocation6 + $0x420] sm:$0xff]  ;;  %1090 = vmatpush.msra.mxu1 %v581_v15 }
  0x9b   : > { %v713_v17 = vld [vmem:[#allocation6 + $0x640] sm:$0xff]  ;;  %1110 = vmatpush.msra.mxu2 %v645_v16 }
  0x9c   : > { %v513_v18 = vld [vmem:[#allocation6] sm:$0xff]  ;;  %1129 = vmatpush.msra.mxu3 %v713_v17 }
  0x9d   : > { %v577_v19 = vld [vmem:[#allocation6 + $0x200] sm:$0xff]  ;;  %1071 = vmatpush.msra.mxu0 %v513_v18 }
  0x9e   : > { %v641_v20 = vld [vmem:[#allocation6 + $0x400] sm:$0xff]  ;;  %1091 = vmatpush.msra.mxu1 %v577_v19 }
  0x9f   : > { %v709_v21 = vld [vmem:[#allocation6 + $0x620] sm:$0xff]  ;;  %1111 = vmatpush.msra.mxu2 %v641_v20 }
  0xa0   : > { %v829_v22 = vld [vmem:[#allocation6 + $0x9e0] sm:$0xff]  ;;  %1130 = vmatpush.msra.mxu3 %v709_v21 }
  0xa1   : > { %v893_v23 = vld [vmem:[#allocation6 + $0xbe0] sm:$0xff]  ;;  %1136 = vmatpush.msrb.mxu0 %v829_v22 }
  0xa2   : > { %v957_v24 = vld [vmem:[#allocation6 + $0xde0] sm:$0xff]  ;;  %1156 = vmatpush.msrb.mxu1 %v893_v23 }
  0xa3   : > { %v705_v25 = vld [vmem:[#allocation6 + $0x600] sm:$0xff]  ;;  %1176 = vmatpush.msrb.mxu2 %v957_v24  ;;  %v2563_v24 = vld.sshfl [vmem:[#allocation1] sm:$0xff pattern:$0x73625140] }
  0xa4   : > { %v825_v26 = vld [vmem:[#allocation6 + $0x9c0] sm:$0xff]  ;;  %1131 = vmatpush.msra.mxu3 %v705_v25  ;;  %v2565_v25 = vld.sshfl [vmem:[#allocation1 + $0x8] sm:$0xff pattern:$0x73625140]  ;;  %1072 = vmatmul.f32.vlgmr.msra.gmra.mxu0 %v2563_v24 }
  0xa5   : > { %v889_v27 = vld [vmem:[#allocation6 + $0xbc0] sm:$0xff]  ;;  %1137 = vmatpush.msrb.mxu0 %v825_v26  ;;  %v2567_v26 = vld.sshfl [vmem:[#allocation1 + $0x10] sm:$0xff pattern:$0x73625140]  ;;  %1092 = vmatmul.f32.vlgmr.msra.gmra.mxu1 %v2565_v25 }
  0xa6   : > { %v953_v28 = vld [vmem:[#allocation6 + $0xdc0] sm:$0xff]  ;;  %1157 = vmatpush.msrb.mxu1 %v889_v27  ;;  %v574_v27 = vld [vmem:[#allocation6 + $0x1e8] sm:$0xff]  ;;  %1112 = vmatmul.f32.vlgmr.msra.gmra.mxu2 %v2567_v26 }
  0xa7   : > { %v1021_v29 = vld [vmem:[#allocation6 + $0xfe0] sm:$0xff]  ;;  %1177 = vmatpush.msrb.mxu2 %v953_v28  ;;  %v638_v28 = vld [vmem:[#allocation6 + $0x3e8] sm:$0xff] }
  0xa8   : > { %v821_v30 = vld [vmem:[#allocation6 + $0x9a0] sm:$0xff]  ;;  %1196 = vmatpush.msrb.mxu3 %v1021_v29  ;;  %v702_v29 = vld [vmem:[#allocation6 + $0x5e8] sm:$0xff] }
  0xa9   : > { %v885_v31 = vld [vmem:[#allocation6 + $0xba0] sm:$0xff]  ;;  %1138 = vmatpush.msrb.mxu0 %v821_v30 }
  0xaa   : > { %v949_v32 = vld [vmem:[#allocation6 + $0xda0] sm:$0xff]  ;;  %1158 = vmatpush.msrb.mxu1 %v885_v31  ;;  %v570_v31 = vld [vmem:[#allocation6 + $0x1c8] sm:$0xff] }
  0xab   : > { %v1017_v33 = vld [vmem:[#allocation6 + $0xfc0] sm:$0xff]  ;;  %1178 = vmatpush.msrb.mxu2 %v949_v32 }
  0xac   : > { %v817_v34 = vld [vmem:[#allocation6 + $0x980] sm:$0xff]  ;;  %1197 = vmatpush.msrb.mxu3 %v1017_v33  ;;  %v634_v33 = vld [vmem:[#allocation6 + $0x3c8] sm:$0xff] }
  0xad   : > { %v881_v35 = vld [vmem:[#allocation6 + $0xb80] sm:$0xff]  ;;  %1139 = vmatpush.msrb.mxu0 %v817_v34  ;;  %v698_v34 = vld [vmem:[#allocation6 + $0x5c8] sm:$0xff] }
  0xae   : > { %v945_v36 = vld [vmem:[#allocation6 + $0xd80] sm:$0xff]  ;;  %1159 = vmatpush.msrb.mxu1 %v881_v35  ;;  %v766_v35 = vld [vmem:[#allocation6 + $0x7e8] sm:$0xff] }
  0xaf   : > { %v1013_v37 = vld [vmem:[#allocation6 + $0xfa0] sm:$0xff]  ;;  %1179 = vmatpush.msrb.mxu2 %v945_v36  ;;  %v566_v36 = vld [vmem:[#allocation6 + $0x1a8] sm:$0xff] }
  0xb0   : > { %v813_v38 = vld [vmem:[#allocation6 + $0x960] sm:$0xff]  ;;  %1198 = vmatpush.msrb.mxu3 %v1013_v37  ;;  %v630_v37 = vld [vmem:[#allocation6 + $0x3a8] sm:$0xff] }
  0xb1   : > { %v877_v39 = vld [vmem:[#allocation6 + $0xb60] sm:$0xff]  ;;  %1140 = vmatpush.msrb.mxu0 %v813_v38  ;;  %v694_v38 = vld [vmem:[#allocation6 + $0x5a8] sm:$0xff] }
  0xb2   : > { %v941_v40 = vld [vmem:[#allocation6 + $0xd60] sm:$0xff]  ;;  %1160 = vmatpush.msrb.mxu1 %v877_v39  ;;  %v762_v39 = vld [vmem:[#allocation6 + $0x7c8] sm:$0xff] }
  0xb3   : > { %v1009_v41 = vld [vmem:[#allocation6 + $0xf80] sm:$0xff]  ;;  %1180 = vmatpush.msrb.mxu2 %v941_v40  ;;  %v562_v40 = vld [vmem:[#allocation6 + $0x188] sm:$0xff] }
  0xb4   : > { %v809_v42 = vld [vmem:[#allocation6 + $0x940] sm:$0xff]  ;;  %1199 = vmatpush.msrb.mxu3 %v1009_v41  ;;  %v626_v41 = vld [vmem:[#allocation6 + $0x388] sm:$0xff] }
  0xb5   : > { %v873_v43 = vld [vmem:[#allocation6 + $0xb40] sm:$0xff]  ;;  %1141 = vmatpush.msrb.mxu0 %v809_v42  ;;  %v690_v42 = vld [vmem:[#allocation6 + $0x588] sm:$0xff] }
  0xb6   : > { %v937_v44 = vld [vmem:[#allocation6 + $0xd40] sm:$0xff]  ;;  %1161 = vmatpush.msrb.mxu1 %v873_v43  ;;  %v758_v43 = vld [vmem:[#allocation6 + $0x7a8] sm:$0xff] }
  0xb7   : > { %v1005_v45 = vld [vmem:[#allocation6 + $0xf60] sm:$0xff]  ;;  %1181 = vmatpush.msrb.mxu2 %v937_v44  ;;  %v2575_v44 = vld.sshfl [vmem:[#allocation1 + $0x30] sm:$0xff pattern:$0x73625140] }
  0xb8   : > { %v805_v46 = vld [vmem:[#allocation6 + $0x920] sm:$0xff]  ;;  %1200 = vmatpush.msrb.mxu3 %v1005_v45  ;;  %v558_v45 = vld [vmem:[#allocation6 + $0x168] sm:$0xff] }
  0xb9   : > { %v869_v47 = vld [vmem:[#allocation6 + $0xb20] sm:$0xff]  ;;  %1142 = vmatpush.msrb.mxu0 %v805_v46  ;;  %v622_v46 = vld [vmem:[#allocation6 + $0x368] sm:$0xff] }
  0xba   : > { %v933_v49 = vld [vmem:[#allocation6 + $0xd20] sm:$0xff]  ;;  %1162 = vmatpush.msrb.mxu1 %v869_v47  ;;  %v686_v47 = vld [vmem:[#allocation6 + $0x568] sm:$0xff] }
  0xbb   : > { %v1001_v50 = vld [vmem:[#allocation6 + $0xf40] sm:$0xff]  ;;  %1182 = vmatpush.msrb.mxu2 %v933_v49  ;;  %v2577_v49 = vld.sshfl [vmem:[#allocation1 + $0x20] sm:$0xff pattern:$0x73625140] }
  0xbc   : > { %v801_v51 = vld [vmem:[#allocation6 + $0x900] sm:$0xff]  ;;  %1201 = vmatpush.msrb.mxu3 %v1001_v50 }
  0xbd   : > { %v865_v52 = vld [vmem:[#allocation6 + $0xb00] sm:$0xff]  ;;  %1143 = vmatpush.msrb.mxu0 %v801_v51  ;;  %v554_v51 = vld [vmem:[#allocation6 + $0x148] sm:$0xff] }
  0xbe   : > { %v929_v56 = vld [vmem:[#allocation6 + $0xd00] sm:$0xff]  ;;  %1163 = vmatpush.msrb.mxu1 %v865_v52  ;;  %v618_v52 = vld [vmem:[#allocation6 + $0x348] sm:$0xff] }
  0xbf   : > { %v997_v57 = vld [vmem:[#allocation6 + $0xf20] sm:$0xff]  ;;  %1183 = vmatpush.msrb.mxu2 %v929_v56  ;;  %v682_v56 = vld [vmem:[#allocation6 + $0x548] sm:$0xff] }
  0xc0   : > { %v797_v61 = vld [vmem:[#allocation6 + $0x8e0] sm:$0xff]  ;;  %1202 = vmatpush.msrb.mxu3 %v997_v57  ;;  %v750_v57 = vld [vmem:[#allocation6 + $0x768] sm:$0xff] }
  0xc1   : > { %v861_v62 = vld [vmem:[#allocation6 + $0xae0] sm:$0xff]  ;;  %1144 = vmatpush.msrb.mxu0 %v797_v61  ;;  %v2583_v61 = vld.sshfl [vmem:[#allocation1 + $0x28] sm:$0xff pattern:$0x73625140] }
  0xc2   : > { %v925_v0 = vld [vmem:[#allocation6 + $0xce0] sm:$0xff]  ;;  %1164 = vmatpush.msrb.mxu1 %v861_v62  ;;  %v550_v62 = vld [vmem:[#allocation6 + $0x128] sm:$0xff] }
  0xc3   : > { %v993_v1 = vld [vmem:[#allocation6 + $0xf00] sm:$0xff]  ;;  %1184 = vmatpush.msrb.mxu2 %v925_v0  ;;  %v614_v0 = vld [vmem:[#allocation6 + $0x328] sm:$0xff] }
  0xc4   : > { %v793_v2 = vld [vmem:[#allocation6 + $0x8c0] sm:$0xff]  ;;  %1203 = vmatpush.msrb.mxu3 %v993_v1  ;;  %v678_v1 = vld [vmem:[#allocation6 + $0x528] sm:$0xff] }
  0xc5   : > { %v857_v4 = vld [vmem:[#allocation6 + $0xac0] sm:$0xff]  ;;  %1145 = vmatpush.msrb.mxu0 %v793_v2  ;;  %v746_v2 = vld [vmem:[#allocation6 + $0x748] sm:$0xff] }
  0xc6   : > { %v921_v55 = vld [vmem:[#allocation6 + $0xcc0] sm:$0xff]  ;;  %1165 = vmatpush.msrb.mxu1 %v857_v4  ;;  %v546_v4 = vld [vmem:[#allocation6 + $0x108] sm:$0xff] }
  0xc7   : > { %v989_v58 = vld [vmem:[#allocation6 + $0xee0] sm:$0xff]  ;;  %1185 = vmatpush.msrb.mxu2 %v921_v55  ;;  %v674_v55 = vld [vmem:[#allocation6 + $0x508] sm:$0xff] }
  0xc8   : > { %v789_v60 = vld [vmem:[#allocation6 + $0x8a0] sm:$0xff]  ;;  %1204 = vmatpush.msrb.mxu3 %v989_v58  ;;  %v742_v58 = vld [vmem:[#allocation6 + $0x728] sm:$0xff] }
  0xc9   : > { %v853_v63 = vld [vmem:[#allocation6 + $0xaa0] sm:$0xff]  ;;  %1146 = vmatpush.msrb.mxu0 %v789_v60  ;;  %v542_v60 = vld [vmem:[#allocation6 + $0xe8] sm:$0xff] }
  0xca   : > { %v917_v3 = vld [vmem:[#allocation6 + $0xca0] sm:$0xff]  ;;  %1166 = vmatpush.msrb.mxu1 %v853_v63  ;;  %v606_v63 = vld [vmem:[#allocation6 + $0x2e8] sm:$0xff] }
  0xcb   : > { %v985_v5 = vld [vmem:[#allocation6 + $0xec0] sm:$0xff]  ;;  %1186 = vmatpush.msrb.mxu2 %v917_v3  ;;  %v670_v3 = vld [vmem:[#allocation6 + $0x4e8] sm:$0xff] }
  0xcc   : > { %v785_v6 = vld [vmem:[#allocation6 + $0x880] sm:$0xff]  ;;  %1205 = vmatpush.msrb.mxu3 %v985_v5  ;;  %v738_v5 = vld [vmem:[#allocation6 + $0x708] sm:$0xff] }
  0xcd   : > { %v849_v7 = vld [vmem:[#allocation6 + $0xa80] sm:$0xff]  ;;  %1147 = vmatpush.msrb.mxu0 %v785_v6  ;;  %v538_v6 = vld [vmem:[#allocation6 + $0xc8] sm:$0xff] }
  0xce   : > { %v913_v8 = vld [vmem:[#allocation6 + $0xc80] sm:$0xff]  ;;  %1167 = vmatpush.msrb.mxu1 %v849_v7  ;;  %v602_v7 = vld [vmem:[#allocation6 + $0x2c8] sm:$0xff] }
  0xcf   : > { %v981_v53 = vld [vmem:[#allocation6 + $0xea0] sm:$0xff]  ;;  %1187 = vmatpush.msrb.mxu2 %v913_v8  ;;  %v666_v8 = vld [vmem:[#allocation6 + $0x4c8] sm:$0xff] }
  0xd0   : > { %v781_v9 = vld [vmem:[#allocation6 + $0x860] sm:$0xff]  ;;  %1206 = vmatpush.msrb.mxu3 %v981_v53  ;;  %v734_v53 = vld [vmem:[#allocation6 + $0x6e8] sm:$0xff] }
  0xd1   : > { %v845_v59 = vld [vmem:[#allocation6 + $0xa60] sm:$0xff]  ;;  %1148 = vmatpush.msrb.mxu0 %v781_v9  ;;  %v534_v9 = vld [vmem:[#allocation6 + $0xa8] sm:$0xff] }
  0xd2   : > { %v909_v10 = vld [vmem:[#allocation6 + $0xc60] sm:$0xff]  ;;  %1168 = vmatpush.msrb.mxu1 %v845_v59  ;;  %v598_v59 = vld [vmem:[#allocation6 + $0x2a8] sm:$0xff] }
  0xd3   : > { %v977_v11 = vld [vmem:[#allocation6 + $0xe80] sm:$0xff]  ;;  %1188 = vmatpush.msrb.mxu2 %v909_v10  ;;  %v662_v10 = vld [vmem:[#allocation6 + $0x4a8] sm:$0xff] }
  0xd4   : > { %v777_v12 = vld [vmem:[#allocation6 + $0x840] sm:$0xff]  ;;  %1207 = vmatpush.msrb.mxu3 %v977_v11  ;;  %v730_v11 = vld [vmem:[#allocation6 + $0x6c8] sm:$0xff] }
  0xd5   : > { %v841_v13 = vld [vmem:[#allocation6 + $0xa40] sm:$0xff]  ;;  %1149 = vmatpush.msrb.mxu0 %v777_v12  ;;  %v530_v12 = vld [vmem:[#allocation6 + $0x88] sm:$0xff] }
  0xd6   : > { %v905_v14 = vld [vmem:[#allocation6 + $0xc40] sm:$0xff]  ;;  %1169 = vmatpush.msrb.mxu1 %v841_v13  ;;  %v594_v13 = vld [vmem:[#allocation6 + $0x288] sm:$0xff] }
  0xd7   : > { %v973_v15 = vld [vmem:[#allocation6 + $0xe60] sm:$0xff]  ;;  %1189 = vmatpush.msrb.mxu2 %v905_v14  ;;  %v658_v14 = vld [vmem:[#allocation6 + $0x488] sm:$0xff] }
  0xd8   : > { %v773_v16 = vld [vmem:[#allocation6 + $0x820] sm:$0xff]  ;;  %1208 = vmatpush.msrb.mxu3 %v973_v15  ;;  %v726_v15 = vld [vmem:[#allocation6 + $0x6a8] sm:$0xff] }
  0xd9   : > { %v837_v17 = vld [vmem:[#allocation6 + $0xa20] sm:$0xff]  ;;  %1150 = vmatpush.msrb.mxu0 %v773_v16  ;;  %v526_v16 = vld [vmem:[#allocation6 + $0x68] sm:$0xff] }
  0xda   : > { %v901_v18 = vld [vmem:[#allocation6 + $0xc20] sm:$0xff]  ;;  %1170 = vmatpush.msrb.mxu1 %v837_v17  ;;  %v590_v17 = vld [vmem:[#allocation6 + $0x268] sm:$0xff] }
  0xdb   : > { %v969_v19 = vld [vmem:[#allocation6 + $0xe40] sm:$0xff]  ;;  %1190 = vmatpush.msrb.mxu2 %v901_v18  ;;  %v654_v18 = vld [vmem:[#allocation6 + $0x468] sm:$0xff] }
  0xdc   : > { %v769_v20 = vld [vmem:[#allocation6 + $0x800] sm:$0xff]  ;;  %1209 = vmatpush.msrb.mxu3 %v969_v19  ;;  %v722_v19 = vld [vmem:[#allocation6 + $0x688] sm:$0xff] }
  0xdd   : > { %v833_v21 = vld [vmem:[#allocation6 + $0xa00] sm:$0xff]  ;;  %1151 = vmatpush.msrb.mxu0 %v769_v20  ;;  %v522_v20 = vld [vmem:[#allocation6 + $0x48] sm:$0xff] }
  0xde   : > { %v897_v22 = vld [vmem:[#allocation6 + $0xc00] sm:$0xff]  ;;  %1171 = vmatpush.msrb.mxu1 %v833_v21  ;;  %1152 = vmatmul.f32.vlgmr.msrb.gmra.mxu0 %v2577_v49  ;;  %v586_v21 = vld [vmem:[#allocation6 + $0x248] sm:$0xff] }
  0xdf   : > { %v965_v23 = vld [vmem:[#allocation6 + $0xe20] sm:$0xff]  ;;  %1191 = vmatpush.msrb.mxu2 %v897_v22  ;;  %1216 = vmatpush.msra.mxu0 %v574_v27  ;;  %v650_v22 = vld [vmem:[#allocation6 + $0x448] sm:$0xff] }
  0xe0   : > { %1210 = vmatpush.msrb.mxu3 %v965_v23  ;;  %v961_v30 = vld [vmem:[#allocation6 + $0xe00] sm:$0xff]  ;;  %1236 = vmatpush.msra.mxu1 %v638_v28  ;;  %v718_v23 = vld [vmem:[#allocation6 + $0x668] sm:$0xff] }
  0xe1   : > { %v2572_v32 = vld.sshfl [vmem:[#allocation1 + $0x18] sm:$0xff pattern:$0x73625140]  ;;  %1256 = vmatpush.msra.mxu2 %v702_v29  ;;  %1217 = vmatpush.msra.mxu0 %v570_v31  ;;  %v518_v27 = vld [vmem:[#allocation6 + $0x28] sm:$0xff] }
  0xe2   : > { %1211 = vmatpush.msrb.mxu3 %v961_v30  ;;  %1237 = vmatpush.msra.mxu1 %v634_v33  ;;  %v2580_v50 = vld.sshfl [vmem:[#allocation1 + $0x38] sm:$0xff pattern:$0x73625140]  ;;  %v582_v28 = vld [vmem:[#allocation6 + $0x228] sm:$0xff] }
  0xe3   : > { %1132 = vmatmul.f32.vlgmr.msra.gmra.mxu3 %v2572_v32  ;;  %1257 = vmatpush.msra.mxu2 %v698_v34  ;;  %v646_v29 = vld [vmem:[#allocation6 + $0x428] sm:$0xff] }
  0xe4   : > { %1276 = vmatpush.msra.mxu3 %v766_v35  ;;  %1218 = vmatpush.msra.mxu0 %v566_v36  ;;  %v714_v30 = vld [vmem:[#allocation6 + $0x648] sm:$0xff] }
  0xe5   : > { %1238 = vmatpush.msra.mxu1 %v630_v37  ;;  %1258 = vmatpush.msra.mxu2 %v694_v38  ;;  %v514_v31 = vld [vmem:[#allocation6 + $0x8] sm:$0xff] }
  0xe6   : > { %1277 = vmatpush.msra.mxu3 %v762_v39  ;;  %1219 = vmatpush.msra.mxu0 %v562_v40  ;;  %v578_v33 = vld [vmem:[#allocation6 + $0x208] sm:$0xff] }
  0xe7   : > { %1239 = vmatpush.msra.mxu1 %v626_v41  ;;  %1259 = vmatpush.msra.mxu2 %v690_v42  ;;  %v642_v34 = vld [vmem:[#allocation6 + $0x408] sm:$0xff] }
  0xe8   : > { %1278 = vmatpush.msra.mxu3 %v758_v43  ;;  %1192 = vmatmul.f32.vlgmr.msrb.gmra.mxu2 %v2575_v44  ;;  %v710_v35 = vld [vmem:[#allocation6 + $0x628] sm:$0xff] }
  0xe9   : > { %1220 = vmatpush.msra.mxu0 %v558_v45  ;;  %1240 = vmatpush.msra.mxu1 %v622_v46  ;;  %v830_v36 = vld [vmem:[#allocation6 + $0x9e8] sm:$0xff] }
  0xea   : > { %1260 = vmatpush.msra.mxu2 %v686_v47  ;;  %1279 = vmatpush.msra.mxu3 %v754_v48  ;;  %v894_v37 = vld [vmem:[#allocation6 + $0xbe8] sm:$0xff] }
  0xeb   : > { %1212 = vmatmul.f32.vlgmr.msrb.gmra.mxu3 %v2580_v50  ;;  %1221 = vmatpush.msra.mxu0 %v554_v51  ;;  %v958_v38 = vld [vmem:[#allocation6 + $0xde8] sm:$0xff] }
  0xec   : > { %1241 = vmatpush.msra.mxu1 %v618_v52  ;;  %1261 = vmatpush.msra.mxu2 %v682_v56  ;;  %v706_v39 = vld [vmem:[#allocation6 + $0x608] sm:$0xff] }
  0xed   : > { %1280 = vmatpush.msra.mxu3 %v750_v57  ;;  %1172 = vmatmul.f32.vlgmr.msrb.gmra.mxu1 %v2583_v61  ;;  %v826_v40 = vld [vmem:[#allocation6 + $0x9c8] sm:$0xff] }
  0xee   : > { %1222 = vmatpush.msra.mxu0 %v550_v62  ;;  %1242 = vmatpush.msra.mxu1 %v614_v0  ;;  %v890_v41 = vld [vmem:[#allocation6 + $0xbc8] sm:$0xff] }
  0xef   : > { %1262 = vmatpush.msra.mxu2 %v678_v1  ;;  %1281 = vmatpush.msra.mxu3 %v746_v2  ;;  %v954_v42 = vld [vmem:[#allocation6 + $0xdc8] sm:$0xff] }
  0xf0   : > { %1223 = vmatpush.msra.mxu0 %v546_v4  ;;  %1243 = vmatpush.msra.mxu1 %v610_v54  ;;  %v1022_v43 = vld [vmem:[#allocation6 + $0xfe8] sm:$0xff] }
  0xf1   : > { %1263 = vmatpush.msra.mxu2 %v674_v55  ;;  %1282 = vmatpush.msra.mxu3 %v742_v58  ;;  %v822_v45 = vld [vmem:[#allocation6 + $0x9a8] sm:$0xff] }
  0xf2   : > { %1224 = vmatpush.msra.mxu0 %v542_v60  ;;  %1244 = vmatpush.msra.mxu1 %v606_v63  ;;  %v886_v46 = vld [vmem:[#allocation6 + $0xba8] sm:$0xff] }
  0xf3   : > { %1264 = vmatpush.msra.mxu2 %v670_v3  ;;  %1283 = vmatpush.msra.mxu3 %v738_v5  ;;  %v950_v47 = vld [vmem:[#allocation6 + $0xda8] sm:$0xff] }
  0xf4   : > { %1225 = vmatpush.msra.mxu0 %v538_v6  ;;  %1245 = vmatpush.msra.mxu1 %v602_v7  ;;  %v1018_v48 = vld [vmem:[#allocation6 + $0xfc8] sm:$0xff] }
  0xf5   : > { %1265 = vmatpush.msra.mxu2 %v666_v8  ;;  %1284 = vmatpush.msra.mxu3 %v734_v53  ;;  %v818_v51 = vld [vmem:[#allocation6 + $0x988] sm:$0xff] }
  0xf6   : > { %1226 = vmatpush.msra.mxu0 %v534_v9  ;;  %1246 = vmatpush.msra.mxu1 %v598_v59  ;;  %v882_v52 = vld [vmem:[#allocation6 + $0xb88] sm:$0xff] }
  0xf7   : > { %1266 = vmatpush.msra.mxu2 %v662_v10  ;;  %1285 = vmatpush.msra.mxu3 %v730_v11  ;;  %v946_v56 = vld [vmem:[#allocation6 + $0xd88] sm:$0xff] }
  0xf8   : > { %1227 = vmatpush.msra.mxu0 %v530_v12  ;;  %1247 = vmatpush.msra.mxu1 %v594_v13  ;;  %v1014_v57 = vld [vmem:[#allocation6 + $0xfa8] sm:$0xff] }
  0xf9   : > { %1267 = vmatpush.msra.mxu2 %v658_v14  ;;  %1286 = vmatpush.msra.mxu3 %v726_v15  ;;  %v814_v62 = vld [vmem:[#allocation6 + $0x968] sm:$0xff] }
  0xfa   : > { %1228 = vmatpush.msra.mxu0 %v526_v16  ;;  %1248 = vmatpush.msra.mxu1 %v590_v17  ;;  %v878_v0 = vld [vmem:[#allocation6 + $0xb68] sm:$0xff] }
  0xfb   : > { %1268 = vmatpush.msra.mxu2 %v654_v18  ;;  %1287 = vmatpush.msra.mxu3 %v722_v19  ;;  %v942_v1 = vld [vmem:[#allocation6 + $0xd68] sm:$0xff] }
  0xfc   : > { %1229 = vmatpush.msra.mxu0 %v522_v20  ;;  %1249 = vmatpush.msra.mxu1 %v586_v21  ;;  %v1010_v2 = vld [vmem:[#allocation6 + $0xf88] sm:$0xff] }
  0xfd   : > { %1269 = vmatpush.msra.mxu2 %v650_v22  ;;  %1288 = vmatpush.msra.mxu3 %v718_v23  ;;  %v810_v4 = vld [vmem:[#allocation6 + $0x948] sm:$0xff] }
  0xfe   : > { %1230 = vmatpush.msra.mxu0 %v518_v27  ;;  %1250 = vmatpush.msra.mxu1 %v582_v28  ;;  %v874_v54 = vld [vmem:[#allocation6 + $0xb48] sm:$0xff] }
  0xff   : > { %1270 = vmatpush.msra.mxu2 %v646_v29  ;;  %1289 = vmatpush.msra.mxu3 %v714_v30  ;;  %v938_v55 = vld [vmem:[#allocation6 + $0xd48] sm:$0xff] }
 0x100   : > { %1231 = vmatpush.msra.mxu0 %v514_v31  ;;  %1251 = vmatpush.msra.mxu1 %v578_v33  ;;  %v1006_v58 = vld [vmem:[#allocation6 + $0xf68] sm:$0xff] }
 0x101   : > { %1271 = vmatpush.msra.mxu2 %v642_v34  ;;  %1290 = vmatpush.msra.mxu3 %v710_v35  ;;  %v806_v60 = vld [vmem:[#allocation6 + $0x928] sm:$0xff] }
 0x102   : > { %1296 = vmatpush.msrb.mxu0 %v830_v36  ;;  %1316 = vmatpush.msrb.mxu1 %v894_v37  ;;  %v870_v63 = vld [vmem:[#allocation6 + $0xb28] sm:$0xff] }
 0x103   : > { %1336 = vmatpush.msrb.mxu2 %v958_v38  ;;  %1291 = vmatpush.msra.mxu3 %v706_v39  ;;  %v934_v3 = vld [vmem:[#allocation6 + $0xd28] sm:$0xff] }
 0x104   : > { %1297 = vmatpush.msrb.mxu0 %v826_v40  ;;  %1317 = vmatpush.msrb.mxu1 %v890_v41  ;;  %v1002_v5 = vld [vmem:[#allocation6 + $0xf48] sm:$0xff] }
 0x105   : > { %1337 = vmatpush.msrb.mxu2 %v954_v42  ;;  %1356 = vmatpush.msrb.mxu3 %v1022_v43  ;;  %v802_v6 = vld [vmem:[#allocation6 + $0x908] sm:$0xff] }
 0x106   : > { %1298 = vmatpush.msrb.mxu0 %v822_v45  ;;  %1318 = vmatpush.msrb.mxu1 %v886_v46  ;;  %v866_v7 = vld [vmem:[#allocation6 + $0xb08] sm:$0xff]  ;;  %v575_v45 = vld [vmem:[#allocation6 + $0x1f0] sm:$0xff] }
 0x107   : > { %1338 = vmatpush.msrb.mxu2 %v950_v47  ;;  %1357 = vmatpush.msrb.mxu3 %v1018_v48  ;;  %v930_v8 = vld [vmem:[#allocation6 + $0xd08] sm:$0xff]  ;;  %v639_v46 = vld [vmem:[#allocation6 + $0x3f0] sm:$0xff] }
 0x108   : > { %1299 = vmatpush.msrb.mxu0 %v818_v51  ;;  %1319 = vmatpush.msrb.mxu1 %v882_v52  ;;  %v998_v53 = vld [vmem:[#allocation6 + $0xf28] sm:$0xff]  ;;  %v703_v47 = vld [vmem:[#allocation6 + $0x5f0] sm:$0xff] }
 0x109   : > { %1339 = vmatpush.msrb.mxu2 %v946_v56  ;;  %1358 = vmatpush.msrb.mxu3 %v1014_v57  ;;  %v798_v9 = vld [vmem:[#allocation6 + $0x8e8] sm:$0xff]  ;;  %v571_v51 = vld [vmem:[#allocation6 + $0x1d0] sm:$0xff] }
 0x10a   : > { %1300 = vmatpush.msrb.mxu0 %v814_v62  ;;  %1320 = vmatpush.msrb.mxu1 %v878_v0  ;;  %v862_v59 = vld [vmem:[#allocation6 + $0xae8] sm:$0xff]  ;;  %v635_v52 = vld [vmem:[#allocation6 + $0x3d0] sm:$0xff] }
 0x10b   : > { %1340 = vmatpush.msrb.mxu2 %v942_v1  ;;  %1359 = vmatpush.msrb.mxu3 %v1010_v2  ;;  %v926_v10 = vld [vmem:[#allocation6 + $0xce8] sm:$0xff]  ;;  %v699_v56 = vld [vmem:[#allocation6 + $0x5d0] sm:$0xff] }
 0x10c   : > { %1301 = vmatpush.msrb.mxu0 %v810_v4  ;;  %1321 = vmatpush.msrb.mxu1 %v874_v54  ;;  %v994_v11 = vld [vmem:[#allocation6 + $0xf08] sm:$0xff]  ;;  %v767_v57 = vld [vmem:[#allocation6 + $0x7f0] sm:$0xff] }
 0x10d   : > { %1341 = vmatpush.msrb.mxu2 %v938_v55  ;;  %1360 = vmatpush.msrb.mxu3 %v1006_v58  ;;  %v794_v12 = vld [vmem:[#allocation6 + $0x8c8] sm:$0xff]  ;;  %v567_v62 = vld [vmem:[#allocation6 + $0x1b0] sm:$0xff] }
 0x10e   : > { %1302 = vmatpush.msrb.mxu0 %v806_v60  ;;  %1322 = vmatpush.msrb.mxu1 %v870_v63  ;;  %v858_v13 = vld [vmem:[#allocation6 + $0xac8] sm:$0xff]  ;;  %v631_v0 = vld [vmem:[#allocation6 + $0x3b0] sm:$0xff] }
 0x10f   : > { %1342 = vmatpush.msrb.mxu2 %v934_v3  ;;  %1361 = vmatpush.msrb.mxu3 %v1002_v5  ;;  %v922_v14 = vld [vmem:[#allocation6 + $0xcc8] sm:$0xff]  ;;  %v763_v1 = vld [vmem:[#allocation6 + $0x7d0] sm:$0xff] }
 0x110   : > { %1303 = vmatpush.msrb.mxu0 %v802_v6  ;;  %1323 = vmatpush.msrb.mxu1 %v866_v7  ;;  %v990_v15 = vld [vmem:[#allocation6 + $0xee8] sm:$0xff]  ;;  %v627_v2 = vld [vmem:[#allocation6 + $0x390] sm:$0xff] }
 0x111   : > { %1343 = vmatpush.msrb.mxu2 %v930_v8  ;;  %1362 = vmatpush.msrb.mxu3 %v998_v53  ;;  %v790_v16 = vld [vmem:[#allocation6 + $0x8a8] sm:$0xff]  ;;  %v691_v4 = vld [vmem:[#allocation6 + $0x590] sm:$0xff] }
 0x112   : > { %1304 = vmatpush.msrb.mxu0 %v798_v9  ;;  %1324 = vmatpush.msrb.mxu1 %v862_v59  ;;  %v854_v17 = vld [vmem:[#allocation6 + $0xaa8] sm:$0xff]  ;;  %v759_v54 = vld [vmem:[#allocation6 + $0x7b0] sm:$0xff] }
 0x113   : > { %1344 = vmatpush.msrb.mxu2 %v926_v10  ;;  %1363 = vmatpush.msrb.mxu3 %v994_v11  ;;  %v918_v18 = vld [vmem:[#allocation6 + $0xca8] sm:$0xff]  ;;  %v559_v55 = vld [vmem:[#allocation6 + $0x170] sm:$0xff] }
 0x114   : > { %1305 = vmatpush.msrb.mxu0 %v794_v12  ;;  %1325 = vmatpush.msrb.mxu1 %v858_v13  ;;  %v986_v19 = vld [vmem:[#allocation6 + $0xec8] sm:$0xff]  ;;  %v623_v58 = vld [vmem:[#allocation6 + $0x370] sm:$0xff] }
 0x115   : > { %1345 = vmatpush.msrb.mxu2 %v922_v14  ;;  %1364 = vmatpush.msrb.mxu3 %v990_v15  ;;  %v786_v20 = vld [vmem:[#allocation6 + $0x888] sm:$0xff]  ;;  %v687_v60 = vld [vmem:[#allocation6 + $0x570] sm:$0xff] }
 0x116   : > { %v850_v21 = vld [vmem:[#allocation6 + $0xa88] sm:$0xff]  ;;  %1306 = vmatpush.msrb.mxu0 %v790_v16  ;;  %1326 = vmatpush.msrb.mxu1 %v854_v17  ;;  %v755_v63 = vld [vmem:[#allocation6 + $0x790] sm:$0xff] }
 0x117   : > { %v914_v22 = vld [vmem:[#allocation6 + $0xc88] sm:$0xff]  ;;  %1346 = vmatpush.msrb.mxu2 %v918_v18  ;;  %1365 = vmatpush.msrb.mxu3 %v986_v19  ;;  %v555_v3 = vld [vmem:[#allocation6 + $0x150] sm:$0xff] }
 0x118   : > { %v982_v23 = vld [vmem:[#allocation6 + $0xea8] sm:$0xff]  ;;  %1307 = vmatpush.msrb.mxu0 %v786_v20  ;;  %1327 = vmatpush.msrb.mxu1 %v850_v21  ;;  %v619_v5 = vld [vmem:[#allocation6 + $0x350] sm:$0xff] }
 0x119   : > { %v782_v27 = vld [vmem:[#allocation6 + $0x868] sm:$0xff]  ;;  %1347 = vmatpush.msrb.mxu2 %v914_v22  ;;  %1366 = vmatpush.msrb.mxu3 %v982_v23  ;;  %v683_v6 = vld [vmem:[#allocation6 + $0x550] sm:$0xff] }
 0x11a   : > { %v846_v28 = vld [vmem:[#allocation6 + $0xa68] sm:$0xff]  ;;  %1308 = vmatpush.msrb.mxu0 %v782_v27  ;;  %1252 = vmatmul.f32.vlgmr.msra.gmra.mxu1 %v2565_v25  ;;  %v563_v25 = vld [vmem:[#allocation6 + $0x190] sm:$0xff] }
 0x11b   : > { %v910_v29 = vld [vmem:[#allocation6 + $0xc68] sm:$0xff]  ;;  %1328 = vmatpush.msrb.mxu1 %v846_v28  ;;  %1232 = vmatmul.f32.vlgmr.msra.gmra.mxu0 %v2563_v24  ;;  %v695_v24 = vld [vmem:[#allocation6 + $0x5b0] sm:$0xff] }
 0x11c   : > { %v978_v30 = vld [vmem:[#allocation6 + $0xe88] sm:$0xff]  ;;  %1348 = vmatpush.msrb.mxu2 %v910_v29  ;;  %1292 = vmatmul.f32.vlgmr.msra.gmra.mxu3 %v2572_v32  ;;  %v751_v7 = vld [vmem:[#allocation6 + $0x770] sm:$0xff] }
 0x11d   : > { %v778_v31 = vld [vmem:[#allocation6 + $0x848] sm:$0xff]  ;;  %1367 = vmatpush.msrb.mxu3 %v978_v30  ;;  %1272 = vmatmul.f32.vlgmr.msra.gmra.mxu2 %v2567_v26  ;;  %v551_v8 = vld [vmem:[#allocation6 + $0x130] sm:$0xff] }
 0x11e   : > { %v842_v33 = vld [vmem:[#allocation6 + $0xa48] sm:$0xff]  ;;  %1309 = vmatpush.msrb.mxu0 %v778_v31  ;;  %v615_v53 = vld [vmem:[#allocation6 + $0x330] sm:$0xff] }
 0x11f   : > { %v906_v34 = vld [vmem:[#allocation6 + $0xc48] sm:$0xff]  ;;  %1329 = vmatpush.msrb.mxu1 %v842_v33  ;;  %v679_v9 = vld [vmem:[#allocation6 + $0x530] sm:$0xff] }
 0x120   : > { %v974_v35 = vld [vmem:[#allocation6 + $0xe68] sm:$0xff]  ;;  %1349 = vmatpush.msrb.mxu2 %v906_v34  ;;  %v747_v59 = vld [vmem:[#allocation6 + $0x750] sm:$0xff] }
 0x121   : > { %v774_v36 = vld [vmem:[#allocation6 + $0x828] sm:$0xff]  ;;  %1368 = vmatpush.msrb.mxu3 %v974_v35  ;;  %v547_v10 = vld [vmem:[#allocation6 + $0x110] sm:$0xff] }
 0x122   : > { %v838_v37 = vld [vmem:[#allocation6 + $0xa28] sm:$0xff]  ;;  %1310 = vmatpush.msrb.mxu0 %v774_v36  ;;  %v611_v11 = vld [vmem:[#allocation6 + $0x310] sm:$0xff] }
 0x123   : > { %v902_v38 = vld [vmem:[#allocation6 + $0xc28] sm:$0xff]  ;;  %1330 = vmatpush.msrb.mxu1 %v838_v37  ;;  %v675_v12 = vld [vmem:[#allocation6 + $0x510] sm:$0xff] }
 0x124   : > { %v970_v39 = vld [vmem:[#allocation6 + $0xe48] sm:$0xff]  ;;  %1350 = vmatpush.msrb.mxu2 %v902_v38  ;;  %v743_v13 = vld [vmem:[#allocation6 + $0x730] sm:$0xff] }
 0x125   : > { %v770_v40 = vld [vmem:[#allocation6 + $0x808] sm:$0xff]  ;;  %1369 = vmatpush.msrb.mxu3 %v970_v39  ;;  %v543_v14 = vld [vmem:[#allocation6 + $0xf0] sm:$0xff] }
 0x126   : > { %v834_v41 = vld [vmem:[#allocation6 + $0xa08] sm:$0xff]  ;;  %1311 = vmatpush.msrb.mxu0 %v770_v40  ;;  %v607_v15 = vld [vmem:[#allocation6 + $0x2f0] sm:$0xff] }
 0x127   : > { %v898_v42 = vld [vmem:[#allocation6 + $0xc08] sm:$0xff]  ;;  %1331 = vmatpush.msrb.mxu1 %v834_v41  ;;  %1312 = vmatmul.f32.vlgmr.msrb.gmra.mxu0 %v2577_v49  ;;  %v671_v16 = vld [vmem:[#allocation6 + $0x4f0] sm:$0xff] }
 0x128   : > { %v966_v43 = vld [vmem:[#allocation6 + $0xe28] sm:$0xff]  ;;  %1351 = vmatpush.msrb.mxu2 %v898_v42  ;;  %1376 = vmatpush.msra.mxu0 %v575_v45  ;;  %v739_v17 = vld [vmem:[#allocation6 + $0x710] sm:$0xff] }
 0x129   : > { %1370 = vmatpush.msrb.mxu3 %v966_v43  ;;  %v962_v48 = vld [vmem:[#allocation6 + $0xe08] sm:$0xff]  ;;  %1396 = vmatpush.msra.mxu1 %v639_v46  ;;  %v539_v18 = vld [vmem:[#allocation6 + $0xd0] sm:$0xff] }
 0x12a   : > { %1416 = vmatpush.msra.mxu2 %v703_v47  ;;  %1377 = vmatpush.msra.mxu0 %v571_v51  ;;  %v603_v19 = vld [vmem:[#allocation6 + $0x2d0] sm:$0xff] }
 0x12b   : > { %1371 = vmatpush.msrb.mxu3 %v962_v48  ;;  %1397 = vmatpush.msra.mxu1 %v635_v52  ;;  %v667_v20 = vld [vmem:[#allocation6 + $0x4d0] sm:$0xff] }
 0x12c   : > { %1417 = vmatpush.msra.mxu2 %v699_v56  ;;  %1378 = vmatpush.msra.mxu0 %v567_v62  ;;  %v735_v21 = vld [vmem:[#allocation6 + $0x6f0] sm:$0xff] }
 0x12d   : > { %1436 = vmatpush.msra.mxu3 %v767_v57  ;;  %1398 = vmatpush.msra.mxu1 %v631_v0  ;;  %v535_v22 = vld [vmem:[#allocation6 + $0xb0] sm:$0xff] }
 0x12e   : > { %1418 = vmatpush.msra.mxu2 %v695_v24  ;;  %1379 = vmatpush.msra.mxu0 %v563_v25  ;;  %v599_v23 = vld [vmem:[#allocation6 + $0x2b0] sm:$0xff] }
 0x12f   : > { %1437 = vmatpush.msra.mxu3 %v763_v1  ;;  %1399 = vmatpush.msra.mxu1 %v627_v2  ;;  %v663_v27 = vld [vmem:[#allocation6 + $0x4b0] sm:$0xff] }
 0x130   : > { %1419 = vmatpush.msra.mxu2 %v691_v4  ;;  %1380 = vmatpush.msra.mxu0 %v559_v55  ;;  %v731_v28 = vld [vmem:[#allocation6 + $0x6d0] sm:$0xff] }
 0x131   : > { %1438 = vmatpush.msra.mxu3 %v759_v54  ;;  %1352 = vmatmul.f32.vlgmr.msrb.gmra.mxu2 %v2575_v44  ;;  %v531_v29 = vld [vmem:[#allocation6 + $0x90] sm:$0xff] }
 0x132   : > { %1400 = vmatpush.msra.mxu1 %v623_v58  ;;  %1420 = vmatpush.msra.mxu2 %v687_v60  ;;  %v595_v30 = vld [vmem:[#allocation6 + $0x290] sm:$0xff] }
 0x133   : > { %1439 = vmatpush.msra.mxu3 %v755_v63  ;;  %1381 = vmatpush.msra.mxu0 %v555_v3  ;;  %v659_v31 = vld [vmem:[#allocation6 + $0x490] sm:$0xff] }
 0x134   : > { %1372 = vmatmul.f32.vlgmr.msrb.gmra.mxu3 %v2580_v50  ;;  %1401 = vmatpush.msra.mxu1 %v619_v5  ;;  %v727_v33 = vld [vmem:[#allocation6 + $0x6b0] sm:$0xff] }
 0x135   : > { %1421 = vmatpush.msra.mxu2 %v683_v6  ;;  %1440 = vmatpush.msra.mxu3 %v751_v7  ;;  %v527_v34 = vld [vmem:[#allocation6 + $0x70] sm:$0xff] }
 0x136   : > { %1332 = vmatmul.f32.vlgmr.msrb.gmra.mxu1 %v2583_v61  ;;  %1382 = vmatpush.msra.mxu0 %v551_v8  ;;  %v591_v35 = vld [vmem:[#allocation6 + $0x270] sm:$0xff] }
 0x137   : > { %1402 = vmatpush.msra.mxu1 %v615_v53  ;;  %1422 = vmatpush.msra.mxu2 %v679_v9  ;;  %v655_v36 = vld [vmem:[#allocation6 + $0x470] sm:$0xff] }
 0x138   : > { %1441 = vmatpush.msra.mxu3 %v747_v59  ;;  %1383 = vmatpush.msra.mxu0 %v547_v10  ;;  %v723_v37 = vld [vmem:[#allocation6 + $0x690] sm:$0xff] }
 0x139   : > { %1403 = vmatpush.msra.mxu1 %v611_v11  ;;  %1423 = vmatpush.msra.mxu2 %v675_v12  ;;  %v523_v38 = vld [vmem:[#allocation6 + $0x50] sm:$0xff] }
 0x13a   : > { %1442 = vmatpush.msra.mxu3 %v743_v13  ;;  %1384 = vmatpush.msra.mxu0 %v543_v14  ;;  %v587_v39 = vld [vmem:[#allocation6 + $0x250] sm:$0xff] }
 0x13b   : > { %1404 = vmatpush.msra.mxu1 %v607_v15  ;;  %1424 = vmatpush.msra.mxu2 %v671_v16  ;;  %v651_v40 = vld [vmem:[#allocation6 + $0x450] sm:$0xff] }
 0x13c   : > { %1443 = vmatpush.msra.mxu3 %v739_v17  ;;  %1385 = vmatpush.msra.mxu0 %v539_v18  ;;  %v719_v41 = vld [vmem:[#allocation6 + $0x670] sm:$0xff] }
 0x13d   : > { %1405 = vmatpush.msra.mxu1 %v603_v19  ;;  %1425 = vmatpush.msra.mxu2 %v667_v20  ;;  %v519_v42 = vld [vmem:[#allocation6 + $0x30] sm:$0xff] }
 0x13e   : > { %1444 = vmatpush.msra.mxu3 %v735_v21  ;;  %1386 = vmatpush.msra.mxu0 %v535_v22  ;;  %v583_v43 = vld [vmem:[#allocation6 + $0x230] sm:$0xff] }
 0x13f   : > { %1406 = vmatpush.msra.mxu1 %v599_v23  ;;  %1426 = vmatpush.msra.mxu2 %v663_v27  ;;  %v647_v45 = vld [vmem:[#allocation6 + $0x430] sm:$0xff] }
 0x140   : > { %1445 = vmatpush.msra.mxu3 %v731_v28  ;;  %1387 = vmatpush.msra.mxu0 %v531_v29  ;;  %v715_v46 = vld [vmem:[#allocation6 + $0x650] sm:$0xff] }
 0x141   : > { %1407 = vmatpush.msra.mxu1 %v595_v30  ;;  %1427 = vmatpush.msra.mxu2 %v659_v31  ;;  %v515_v47 = vld [vmem:[#allocation6 + $0x10] sm:$0xff] }
 0x142   : > { %1446 = vmatpush.msra.mxu3 %v727_v33  ;;  %1388 = vmatpush.msra.mxu0 %v527_v34  ;;  %v579_v48 = vld [vmem:[#allocation6 + $0x210] sm:$0xff] }
 0x143   : > { %1408 = vmatpush.msra.mxu1 %v591_v35  ;;  %1428 = vmatpush.msra.mxu2 %v655_v36  ;;  %v643_v51 = vld [vmem:[#allocation6 + $0x410] sm:$0xff] }
 0x144   : > { %1447 = vmatpush.msra.mxu3 %v723_v37  ;;  %1389 = vmatpush.msra.mxu0 %v523_v38  ;;  %v711_v52 = vld [vmem:[#allocation6 + $0x630] sm:$0xff] }
 0x145   : > { %1409 = vmatpush.msra.mxu1 %v587_v39  ;;  %1429 = vmatpush.msra.mxu2 %v651_v40  ;;  %v831_v56 = vld [vmem:[#allocation6 + $0x9f0] sm:$0xff] }
 0x146   : > { %1448 = vmatpush.msra.mxu3 %v719_v41  ;;  %1390 = vmatpush.msra.mxu0 %v519_v42  ;;  %v895_v57 = vld [vmem:[#allocation6 + $0xbf0] sm:$0xff] }
 0x147   : > { %1410 = vmatpush.msra.mxu1 %v583_v43  ;;  %1430 = vmatpush.msra.mxu2 %v647_v45  ;;  %v959_v62 = vld [vmem:[#allocation6 + $0xdf0] sm:$0xff] }
 0x148   : > { %1449 = vmatpush.msra.mxu3 %v715_v46  ;;  %1391 = vmatpush.msra.mxu0 %v515_v47  ;;  %v707_v0 = vld [vmem:[#allocation6 + $0x610] sm:$0xff] }
 0x149   : > { %1411 = vmatpush.msra.mxu1 %v579_v48  ;;  %1431 = vmatpush.msra.mxu2 %v643_v51  ;;  %v827_v24 = vld [vmem:[#allocation6 + $0x9d0] sm:$0xff]  ;;  %v2596_v48 = vld.sshfl [vmem:[#allocation1] sm:$0xff pattern:$0x73625140] }
 0x14a   : > { %1450 = vmatpush.msra.mxu3 %v711_v52  ;;  %v891_v1 = vld [vmem:[#allocation6 + $0xbd0] sm:$0xff]  ;;  %1456 = vmatpush.msrb.mxu0 %v831_v56 }
 0x14b   : > { %1476 = vmatpush.msrb.mxu1 %v895_v57  ;;  %v955_v25 = vld [vmem:[#allocation6 + $0xdd0] sm:$0xff]  ;;  %1496 = vmatpush.msrb.mxu2 %v959_v62 }
 0x14c   : > { %v1023_v2 = vld [vmem:[#allocation6 + $0xff0] sm:$0xff]  ;;  %1451 = vmatpush.msra.mxu3 %v707_v0  ;;  %1457 = vmatpush.msrb.mxu0 %v827_v24 }
 0x14d   : > { %v823_v4 = vld [vmem:[#allocation6 + $0x9b0] sm:$0xff]  ;;  %1477 = vmatpush.msrb.mxu1 %v891_v1  ;;  %1497 = vmatpush.msrb.mxu2 %v955_v25 }
 0x14e   : > { %v887_v54 = vld [vmem:[#allocation6 + $0xbb0] sm:$0xff]  ;;  %1516 = vmatpush.msrb.mxu3 %v1023_v2  ;;  %1458 = vmatpush.msrb.mxu0 %v823_v4  ;;  %v640_v2 = vld [vmem:[#allocation6 + $0x3f8] sm:$0xff] }
 0x14f   : > { %v951_v55 = vld [vmem:[#allocation6 + $0xdb0] sm:$0xff]  ;;  %1478 = vmatpush.msrb.mxu1 %v887_v54  ;;  %1432 = vmatmul.f32.vlgmr.msra.gmra.mxu2 %v2567_v26  ;;  %v704_v4 = vld [vmem:[#allocation6 + $0x5f8] sm:$0xff] }
 0x150   : > { %v1019_v58 = vld [vmem:[#allocation6 + $0xfd0] sm:$0xff]  ;;  %1498 = vmatpush.msrb.mxu2 %v951_v55  ;;  %1392 = vmatmul.f32.vlgmr.msra.gmra.mxu0 %v2596_v48  ;;  %v572_v55 = vld [vmem:[#allocation6 + $0x1d8] sm:$0xff] }
 0x151   : > { %v819_v60 = vld [vmem:[#allocation6 + $0x990] sm:$0xff]  ;;  %1517 = vmatpush.msrb.mxu3 %v1019_v58  ;;  %v636_v58 = vld [vmem:[#allocation6 + $0x3d8] sm:$0xff] }
 0x152   : > { %v883_v63 = vld [vmem:[#allocation6 + $0xb90] sm:$0xff]  ;;  %1459 = vmatpush.msrb.mxu0 %v819_v60  ;;  %1452 = vmatmul.f32.vlgmr.msra.gmra.mxu3 %v2572_v32  ;;  %v576_v32 = vld [vmem:[#allocation6 + $0x1f8] sm:$0xff] }
 0x153   : > { %v947_v3 = vld [vmem:[#allocation6 + $0xd90] sm:$0xff]  ;;  %1479 = vmatpush.msrb.mxu1 %v883_v63  ;;  %v700_v60 = vld [vmem:[#allocation6 + $0x5d8] sm:$0xff] }
 0x154   : > { %v1015_v5 = vld [vmem:[#allocation6 + $0xfb0] sm:$0xff]  ;;  %1499 = vmatpush.msrb.mxu2 %v947_v3  ;;  %v768_v63 = vld [vmem:[#allocation6 + $0x7f8] sm:$0xff] }
 0x155   : > { %v815_v6 = vld [vmem:[#allocation6 + $0x970] sm:$0xff]  ;;  %1518 = vmatpush.msrb.mxu3 %v1015_v5  ;;  %v568_v3 = vld [vmem:[#allocation6 + $0x1b8] sm:$0xff] }
 0x156   : > { %v879_v7 = vld [vmem:[#allocation6 + $0xb70] sm:$0xff]  ;;  %1460 = vmatpush.msrb.mxu0 %v815_v6  ;;  %v632_v5 = vld [vmem:[#allocation6 + $0x3b8] sm:$0xff] }
 0x157   : > { %v943_v8 = vld [vmem:[#allocation6 + $0xd70] sm:$0xff]  ;;  %1480 = vmatpush.msrb.mxu1 %v879_v7  ;;  %v696_v6 = vld [vmem:[#allocation6 + $0x5b8] sm:$0xff] }
 0x158   : > { %v1011_v53 = vld [vmem:[#allocation6 + $0xf90] sm:$0xff]  ;;  %1500 = vmatpush.msrb.mxu2 %v943_v8  ;;  %v764_v7 = vld [vmem:[#allocation6 + $0x7d8] sm:$0xff] }
 0x159   : > { %v811_v9 = vld [vmem:[#allocation6 + $0x950] sm:$0xff]  ;;  %1519 = vmatpush.msrb.mxu3 %v1011_v53  ;;  %v628_v8 = vld [vmem:[#allocation6 + $0x398] sm:$0xff] }
 0x15a   : > { %v875_v59 = vld [vmem:[#allocation6 + $0xb50] sm:$0xff]  ;;  %1461 = vmatpush.msrb.mxu0 %v811_v9  ;;  %v692_v53 = vld [vmem:[#allocation6 + $0x598] sm:$0xff] }
 0x15b   : > { %v939_v10 = vld [vmem:[#allocation6 + $0xd50] sm:$0xff]  ;;  %1481 = vmatpush.msrb.mxu1 %v875_v59  ;;  %v760_v9 = vld [vmem:[#allocation6 + $0x7b8] sm:$0xff] }
 0x15c   : > { %v1007_v11 = vld [vmem:[#allocation6 + $0xf70] sm:$0xff]  ;;  %1501 = vmatpush.msrb.mxu2 %v939_v10  ;;  %v688_v59 = vld [vmem:[#allocation6 + $0x578] sm:$0xff] }
 0x15d   : > { %v807_v12 = vld [vmem:[#allocation6 + $0x930] sm:$0xff]  ;;  %1520 = vmatpush.msrb.mxu3 %v1007_v11  ;;  %v756_v10 = vld [vmem:[#allocation6 + $0x798] sm:$0xff] }
 0x15e   : > { %v871_v13 = vld [vmem:[#allocation6 + $0xb30] sm:$0xff]  ;;  %1462 = vmatpush.msrb.mxu0 %v807_v12  ;;  %v556_v11 = vld [vmem:[#allocation6 + $0x158] sm:$0xff] }
 0x15f   : > { %v935_v14 = vld [vmem:[#allocation6 + $0xd30] sm:$0xff]  ;;  %1482 = vmatpush.msrb.mxu1 %v871_v13  ;;  %v620_v12 = vld [vmem:[#allocation6 + $0x358] sm:$0xff] }
 0x160   : > { %v1003_v15 = vld [vmem:[#allocation6 + $0xf50] sm:$0xff]  ;;  %1502 = vmatpush.msrb.mxu2 %v935_v14  ;;  %v752_v13 = vld [vmem:[#allocation6 + $0x778] sm:$0xff] }
 0x161   : > { %v803_v16 = vld [vmem:[#allocation6 + $0x910] sm:$0xff]  ;;  %1521 = vmatpush.msrb.mxu3 %v1003_v15  ;;  %v552_v14 = vld [vmem:[#allocation6 + $0x138] sm:$0xff] }
 0x162   : > { %v867_v17 = vld [vmem:[#allocation6 + $0xb10] sm:$0xff]  ;;  %1463 = vmatpush.msrb.mxu0 %v803_v16  ;;  %v616_v15 = vld [vmem:[#allocation6 + $0x338] sm:$0xff] }
 0x163   : > { %v931_v18 = vld [vmem:[#allocation6 + $0xd10] sm:$0xff]  ;;  %1483 = vmatpush.msrb.mxu1 %v867_v17  ;;  %v680_v16 = vld [vmem:[#allocation6 + $0x538] sm:$0xff] }
 0x164   : > { %v999_v19 = vld [vmem:[#allocation6 + $0xf30] sm:$0xff]  ;;  %1503 = vmatpush.msrb.mxu2 %v931_v18  ;;  %v748_v17 = vld [vmem:[#allocation6 + $0x758] sm:$0xff] }
 0x165   : > { %v799_v20 = vld [vmem:[#allocation6 + $0x8f0] sm:$0xff]  ;;  %1522 = vmatpush.msrb.mxu3 %v999_v19  ;;  %v548_v18 = vld [vmem:[#allocation6 + $0x118] sm:$0xff] }
 0x166   : > { %v863_v21 = vld [vmem:[#allocation6 + $0xaf0] sm:$0xff]  ;;  %1464 = vmatpush.msrb.mxu0 %v799_v20  ;;  %v612_v19 = vld [vmem:[#allocation6 + $0x318] sm:$0xff] }
 0x167   : > { %v927_v22 = vld [vmem:[#allocation6 + $0xcf0] sm:$0xff]  ;;  %1484 = vmatpush.msrb.mxu1 %v863_v21  ;;  %v676_v20 = vld [vmem:[#allocation6 + $0x518] sm:$0xff] }
 0x168   : > { %v995_v23 = vld [vmem:[#allocation6 + $0xf10] sm:$0xff]  ;;  %1504 = vmatpush.msrb.mxu2 %v927_v22  ;;  %v744_v21 = vld [vmem:[#allocation6 + $0x738] sm:$0xff] }
 0x169   : > { %v795_v27 = vld [vmem:[#allocation6 + $0x8d0] sm:$0xff]  ;;  %1523 = vmatpush.msrb.mxu3 %v995_v23  ;;  %v544_v22 = vld [vmem:[#allocation6 + $0xf8] sm:$0xff] }
 0x16a   : > { %v859_v28 = vld [vmem:[#allocation6 + $0xad0] sm:$0xff]  ;;  %1465 = vmatpush.msrb.mxu0 %v795_v27  ;;  %v608_v23 = vld [vmem:[#allocation6 + $0x2f8] sm:$0xff] }
 0x16b   : > { %v923_v29 = vld [vmem:[#allocation6 + $0xcd0] sm:$0xff]  ;;  %1485 = vmatpush.msrb.mxu1 %v859_v28  ;;  %v672_v27 = vld [vmem:[#allocation6 + $0x4f8] sm:$0xff] }
 0x16c   : > { %v991_v30 = vld [vmem:[#allocation6 + $0xef0] sm:$0xff]  ;;  %1505 = vmatpush.msrb.mxu2 %v923_v29  ;;  %v740_v28 = vld [vmem:[#allocation6 + $0x718] sm:$0xff] }
 0x16d   : > { %v791_v31 = vld [vmem:[#allocation6 + $0x8b0] sm:$0xff]  ;;  %1524 = vmatpush.msrb.mxu3 %v991_v30  ;;  %v540_v29 = vld [vmem:[#allocation6 + $0xd8] sm:$0xff] }
 0x16e   : > { %v855_v33 = vld [vmem:[#allocation6 + $0xab0] sm:$0xff]  ;;  %1466 = vmatpush.msrb.mxu0 %v791_v31  ;;  %v604_v30 = vld [vmem:[#allocation6 + $0x2d8] sm:$0xff] }
 0x16f   : > { %v919_v34 = vld [vmem:[#allocation6 + $0xcb0] sm:$0xff]  ;;  %1486 = vmatpush.msrb.mxu1 %v855_v33  ;;  %v668_v31 = vld [vmem:[#allocation6 + $0x4d8] sm:$0xff] }
 0x170   : > { %v987_v35 = vld [vmem:[#allocation6 + $0xed0] sm:$0xff]  ;;  %1506 = vmatpush.msrb.mxu2 %v919_v34  ;;  %v736_v33 = vld [vmem:[#allocation6 + $0x6f8] sm:$0xff] }
 0x171   : > { %v787_v36 = vld [vmem:[#allocation6 + $0x890] sm:$0xff]  ;;  %1525 = vmatpush.msrb.mxu3 %v987_v35  ;;  %v536_v34 = vld [vmem:[#allocation6 + $0xb8] sm:$0xff] }
 0x172   : > { %v851_v37 = vld [vmem:[#allocation6 + $0xa90] sm:$0xff]  ;;  %1467 = vmatpush.msrb.mxu0 %v787_v36  ;;  %v600_v35 = vld [vmem:[#allocation6 + $0x2b8] sm:$0xff] }
 0x173   : > { %v915_v38 = vld [vmem:[#allocation6 + $0xc90] sm:$0xff]  ;;  %1487 = vmatpush.msrb.mxu1 %v851_v37  ;;  %v664_v36 = vld [vmem:[#allocation6 + $0x4b8] sm:$0xff] }
 0x174   : > { %v983_v39 = vld [vmem:[#allocation6 + $0xeb0] sm:$0xff]  ;;  %1507 = vmatpush.msrb.mxu2 %v915_v38  ;;  %v732_v37 = vld [vmem:[#allocation6 + $0x6d8] sm:$0xff] }
 0x175   : > { %v783_v40 = vld [vmem:[#allocation6 + $0x870] sm:$0xff]  ;;  %1526 = vmatpush.msrb.mxu3 %v983_v39  ;;  %v532_v38 = vld [vmem:[#allocation6 + $0x98] sm:$0xff] }
 0x176   : > { %v847_v41 = vld [vmem:[#allocation6 + $0xa70] sm:$0xff]  ;;  %1468 = vmatpush.msrb.mxu0 %v783_v40  ;;  %v596_v39 = vld [vmem:[#allocation6 + $0x298] sm:$0xff] }
 0x177   : > { %v911_v42 = vld [vmem:[#allocation6 + $0xc70] sm:$0xff]  ;;  %1488 = vmatpush.msrb.mxu1 %v847_v41  ;;  %v660_v40 = vld [vmem:[#allocation6 + $0x498] sm:$0xff] }
 0x178   : > { %v979_v43 = vld [vmem:[#allocation6 + $0xe90] sm:$0xff]  ;;  %1508 = vmatpush.msrb.mxu2 %v911_v42  ;;  %v728_v41 = vld [vmem:[#allocation6 + $0x6b8] sm:$0xff] }
 0x179   : > { %v779_v45 = vld [vmem:[#allocation6 + $0x850] sm:$0xff]  ;;  %1527 = vmatpush.msrb.mxu3 %v979_v43  ;;  %v528_v42 = vld [vmem:[#allocation6 + $0x78] sm:$0xff] }
 0x17a   : > { %v843_v46 = vld [vmem:[#allocation6 + $0xa50] sm:$0xff]  ;;  %1469 = vmatpush.msrb.mxu0 %v779_v45  ;;  %v592_v43 = vld [vmem:[#allocation6 + $0x278] sm:$0xff] }
 0x17b   : > { %v907_v47 = vld [vmem:[#allocation6 + $0xc50] sm:$0xff]  ;;  %1489 = vmatpush.msrb.mxu1 %v843_v46  ;;  %v656_v45 = vld [vmem:[#allocation6 + $0x478] sm:$0xff] }
 0x17c   : > { %v975_v51 = vld [vmem:[#allocation6 + $0xe70] sm:$0xff]  ;;  %1509 = vmatpush.msrb.mxu2 %v907_v47  ;;  %v724_v46 = vld [vmem:[#allocation6 + $0x698] sm:$0xff] }
 0x17d   : > { %v775_v52 = vld [vmem:[#allocation6 + $0x830] sm:$0xff]  ;;  %1528 = vmatpush.msrb.mxu3 %v975_v51  ;;  %v524_v47 = vld [vmem:[#allocation6 + $0x58] sm:$0xff] }
 0x17e   : > { %v839_v56 = vld [vmem:[#allocation6 + $0xa30] sm:$0xff]  ;;  %1470 = vmatpush.msrb.mxu0 %v775_v52  ;;  %v588_v51 = vld [vmem:[#allocation6 + $0x258] sm:$0xff] }
 0x17f   : > { %v903_v26 = vld [vmem:[#allocation6 + $0xc30] sm:$0xff]  ;;  %1490 = vmatpush.msrb.mxu1 %v839_v56  ;;  %v652_v52 = vld [vmem:[#allocation6 + $0x458] sm:$0xff] }
 0x180   : > { %v971_v57 = vld [vmem:[#allocation6 + $0xe50] sm:$0xff]  ;;  %1510 = vmatpush.msrb.mxu2 %v903_v26  ;;  %v720_v56 = vld [vmem:[#allocation6 + $0x678] sm:$0xff] }
 0x181   : > { %v2600_v62 = vld.sshfl [vmem:[#allocation1 + $0x8] sm:$0xff pattern:$0x73625140]  ;;  %1529 = vmatpush.msrb.mxu3 %v971_v57  ;;  %v520_v26 = vld [vmem:[#allocation6 + $0x38] sm:$0xff] }
 0x182   : > { %1412 = vmatmul.f32.vlgmr.msra.gmra.mxu1 %v2600_v62  ;;  %v771_v0 = vld [vmem:[#allocation6 + $0x810] sm:$0xff]  ;;  %v584_v57 = vld [vmem:[#allocation6 + $0x238] sm:$0xff] }
 0x183   : > { %v835_v24 = vld [vmem:[#allocation6 + $0xa10] sm:$0xff]  ;;  %1471 = vmatpush.msrb.mxu0 %v771_v0  ;;  %v648_v0 = vld [vmem:[#allocation6 + $0x438] sm:$0xff] }
 0x184   : > { %v899_v1 = vld [vmem:[#allocation6 + $0xc10] sm:$0xff]  ;;  %1491 = vmatpush.msrb.mxu1 %v835_v24  ;;  %1472 = vmatmul.f32.vlgmr.msrb.gmra.mxu0 %v2577_v49  ;;  %v560_v49 = vld [vmem:[#allocation6 + $0x178] sm:$0xff] }
 0x185   : > { %v967_v25 = vld [vmem:[#allocation6 + $0xe30] sm:$0xff]  ;;  %1511 = vmatpush.msrb.mxu2 %v899_v1  ;;  %1536 = vmatpush.msra.mxu0 %v576_v32  ;;  %v716_v24 = vld [vmem:[#allocation6 + $0x658] sm:$0xff] }
 0x186   : > { %1530 = vmatpush.msrb.mxu3 %v967_v25  ;;  %v963_v54 = vld [vmem:[#allocation6 + $0xe10] sm:$0xff]  ;;  %1512 = vmatmul.f32.vlgmr.msrb.gmra.mxu2 %v2575_v44  ;;  %v564_v44 = vld [vmem:[#allocation6 + $0x198] sm:$0xff] }
 0x187   : > { %1556 = vmatpush.msra.mxu1 %v640_v2  ;;  %1576 = vmatpush.msra.mxu2 %v704_v4  ;;  %v516_v1 = vld [vmem:[#allocation6 + $0x18] sm:$0xff] }
 0x188   : > { %1531 = vmatpush.msrb.mxu3 %v963_v54  ;;  %1537 = vmatpush.msra.mxu0 %v572_v55  ;;  %v580_v25 = vld [vmem:[#allocation6 + $0x218] sm:$0xff] }
 0x189   : > { %1532 = vmatmul.f32.vlgmr.msrb.gmra.mxu3 %v2580_v50  ;;  %1557 = vmatpush.msra.mxu1 %v636_v58  ;;  %v624_v50 = vld [vmem:[#allocation6 + $0x378] sm:$0xff] }
 0x18a   : > { %1577 = vmatpush.msra.mxu2 %v700_v60  ;;  %1596 = vmatpush.msra.mxu3 %v768_v63  ;;  %v644_v32 = vld [vmem:[#allocation6 + $0x418] sm:$0xff] }
 0x18b   : > { %1492 = vmatmul.f32.vlgmr.msrb.gmra.mxu1 %v2583_v61  ;;  %1538 = vmatpush.msra.mxu0 %v568_v3  ;;  %v684_v61 = vld [vmem:[#allocation6 + $0x558] sm:$0xff] }
 0x18c   : > { %1558 = vmatpush.msra.mxu1 %v632_v5  ;;  %1578 = vmatpush.msra.mxu2 %v696_v6  ;;  %v712_v2 = vld [vmem:[#allocation6 + $0x638] sm:$0xff] }
 0x18d   : > { %1597 = vmatpush.msra.mxu3 %v764_v7  ;;  %1539 = vmatpush.msra.mxu0 %v564_v44  ;;  %v832_v4 = vld [vmem:[#allocation6 + $0x9f8] sm:$0xff] }
 0x18e   : > { %1559 = vmatpush.msra.mxu1 %v628_v8  ;;  %1579 = vmatpush.msra.mxu2 %v692_v53  ;;  %v896_v54 = vld [vmem:[#allocation6 + $0xbf8] sm:$0xff] }
 0x18f   : > { %1598 = vmatpush.msra.mxu3 %v760_v9  ;;  %1540 = vmatpush.msra.mxu0 %v560_v49  ;;  %v960_v55 = vld [vmem:[#allocation6 + $0xdf8] sm:$0xff] }
 0x190   : > { %1560 = vmatpush.msra.mxu1 %v624_v50  ;;  %1580 = vmatpush.msra.mxu2 %v688_v59  ;;  %v708_v58 = vld [vmem:[#allocation6 + $0x618] sm:$0xff] }
 0x191   : > { %1599 = vmatpush.msra.mxu3 %v756_v10  ;;  %1541 = vmatpush.msra.mxu0 %v556_v11  ;;  %v828_v60 = vld [vmem:[#allocation6 + $0x9d8] sm:$0xff] }
 0x192   : > { %1561 = vmatpush.msra.mxu1 %v620_v12  ;;  %1581 = vmatpush.msra.mxu2 %v684_v61  ;;  %v892_v63 = vld [vmem:[#allocation6 + $0xbd8] sm:$0xff] }
 0x193   : > { %1600 = vmatpush.msra.mxu3 %v752_v13  ;;  %1542 = vmatpush.msra.mxu0 %v552_v14  ;;  %v956_v3 = vld [vmem:[#allocation6 + $0xdd8] sm:$0xff] }
 0x194   : > { %1562 = vmatpush.msra.mxu1 %v616_v15  ;;  %1582 = vmatpush.msra.mxu2 %v680_v16  ;;  %v1024_v5 = vld [vmem:[#allocation6 + $0xff8] sm:$0xff] }
 0x195   : > { %1601 = vmatpush.msra.mxu3 %v748_v17  ;;  %1543 = vmatpush.msra.mxu0 %v548_v18  ;;  %v824_v6 = vld [vmem:[#allocation6 + $0x9b8] sm:$0xff] }
 0x196   : > { %1563 = vmatpush.msra.mxu1 %v612_v19  ;;  %1583 = vmatpush.msra.mxu2 %v676_v20  ;;  %v888_v7 = vld [vmem:[#allocation6 + $0xbb8] sm:$0xff]  ;;  %v2607_v20 = vpop.f32.mrf.mxu0 }
 0x197   : > { %1602 = vmatpush.msra.mxu3 %v744_v21  ;;  %1544 = vmatpush.msra.mxu0 %v544_v22  ;;  %v952_v44 = vld [vmem:[#allocation6 + $0xdb8] sm:$0xff] }
 0x198   : > { %1564 = vmatpush.msra.mxu1 %v608_v23  ;;  %1584 = vmatpush.msra.mxu2 %v672_v27  ;;  %v1020_v8 = vld [vmem:[#allocation6 + $0xfd8] sm:$0xff] }
 0x199   : > { %1603 = vmatpush.msra.mxu3 %v740_v28  ;;  %1545 = vmatpush.msra.mxu0 %v540_v29  ;;  %v820_v53 = vld [vmem:[#allocation6 + $0x998] sm:$0xff] }
 0x19a   : > { %1565 = vmatpush.msra.mxu1 %v604_v30  ;;  %1585 = vmatpush.msra.mxu2 %v668_v31  ;;  %v884_v9 = vld [vmem:[#allocation6 + $0xb98] sm:$0xff] }
 0x19b   : > { %1604 = vmatpush.msra.mxu3 %v736_v33  ;;  %1546 = vmatpush.msra.mxu0 %v536_v34  ;;  %v948_v49 = vld [vmem:[#allocation6 + $0xd98] sm:$0xff]  ;;  %v2609_v33 = vpop.f32.mrf.mxu1 }
 0x19c   : > { %1566 = vmatpush.msra.mxu1 %v600_v35  ;;  %1586 = vmatpush.msra.mxu2 %v664_v36  ;;  %v1016_v50 = vld [vmem:[#allocation6 + $0xfb8] sm:$0xff] }
 0x19d   : > { %1605 = vmatpush.msra.mxu3 %v732_v37  ;;  %1547 = vmatpush.msra.mxu0 %v532_v38  ;;  %v816_v59 = vld [vmem:[#allocation6 + $0x978] sm:$0xff] }
 0x19e   : > { %1567 = vmatpush.msra.mxu1 %v596_v39  ;;  %1587 = vmatpush.msra.mxu2 %v660_v40  ;;  %v880_v10 = vld [vmem:[#allocation6 + $0xb78] sm:$0xff] }
 0x19f   : > { %1606 = vmatpush.msra.mxu3 %v728_v41  ;;  %1548 = vmatpush.msra.mxu0 %v528_v42  ;;  %v944_v11 = vld [vmem:[#allocation6 + $0xd78] sm:$0xff]  ;;  %v2611_v42 = vpop.f32.mrf.mxu2 }
 0x1a0   : > { %1568 = vmatpush.msra.mxu1 %v592_v43  ;;  %1588 = vmatpush.msra.mxu2 %v656_v45  ;;  %v1012_v12 = vld [vmem:[#allocation6 + $0xf98] sm:$0xff] }
 0x1a1   : > { %1607 = vmatpush.msra.mxu3 %v724_v46  ;;  %1549 = vmatpush.msra.mxu0 %v524_v47  ;;  %v812_v61 = vld [vmem:[#allocation6 + $0x958] sm:$0xff] }
 0x1a2   : > { %1569 = vmatpush.msra.mxu1 %v588_v51  ;;  %1589 = vmatpush.msra.mxu2 %v652_v52  ;;  %v876_v13 = vld [vmem:[#allocation6 + $0xb58] sm:$0xff]  ;;  %v2613_v51 = vpop.f32.mrf.mxu0 }
 0x1a3   : > { %1608 = vmatpush.msra.mxu3 %v720_v56  ;;  %1550 = vmatpush.msra.mxu0 %v520_v26  ;;  %v940_v14 = vld [vmem:[#allocation6 + $0xd58] sm:$0xff] }
 0x1a4   : > { %1570 = vmatpush.msra.mxu1 %v584_v57  ;;  %1590 = vmatpush.msra.mxu2 %v648_v0  ;;  %v1008_v15 = vld [vmem:[#allocation6 + $0xf78] sm:$0xff]  ;;  %v2615_v57 = vpop.f32.mrf.mxu3 }
 0x1a5   : > { %1609 = vmatpush.msra.mxu3 %v716_v24  ;;  %1551 = vmatpush.msra.mxu0 %v516_v1  ;;  %v808_v16 = vld [vmem:[#allocation6 + $0x938] sm:$0xff] }
 0x1a6   : > { %1571 = vmatpush.msra.mxu1 %v580_v25  ;;  %1591 = vmatpush.msra.mxu2 %v644_v32  ;;  %v872_v17 = vld [vmem:[#allocation6 + $0xb38] sm:$0xff]  ;;  %v2617_v25 = vld [vmem:[#allocation8] sm:$0xf]  ;;  %v2619_v32 = vpop.f32.mrf.mxu1 }
 0x1a7   : > { %1610 = vmatpush.msra.mxu3 %v712_v2  ;;  %1616 = vmatpush.msrb.mxu0 %v832_v4  ;;  %v936_v18 = vld [vmem:[#allocation6 + $0xd38] sm:$0xff] }
 0x1a8   : > { %1636 = vmatpush.msrb.mxu1 %v896_v54  ;;  %1656 = vmatpush.msrb.mxu2 %v960_v55  ;;  %v1004_v19 = vld [vmem:[#allocation6 + $0xf58] sm:$0xff]  ;;  %v2100_v55 = vld.sshfl [vmem:[#allocation1 + $0x18] sm:$0xff pattern:$0x73625140] }
 0x1a9   : > { %1611 = vmatpush.msra.mxu3 %v708_v58  ;;  %1617 = vmatpush.msrb.mxu0 %v828_v60  ;;  %v804_v21 = vld [vmem:[#allocation6 + $0x918] sm:$0xff] }
 0x1aa   : > { %1637 = vmatpush.msrb.mxu1 %v892_v63  ;;  %1657 = vmatpush.msrb.mxu2 %v956_v3  ;;  %v868_v22 = vld [vmem:[#allocation6 + $0xb18] sm:$0xff]  ;;  %v1027_v63 = vperm.slane %v2617_v25, 0 }
 0x1ab   : > { %1676 = vmatpush.msrb.mxu3 %v1024_v5  ;;  %1618 = vmatpush.msrb.mxu0 %v824_v6  ;;  %v932_v23 = vld [vmem:[#allocation6 + $0xd18] sm:$0xff]  ;;  %v1028_v6 = vperm.slane %v2617_v25, 1 }
 0x1ac   : > { %1638 = vmatpush.msrb.mxu1 %v888_v7  ;;  %1658 = vmatpush.msrb.mxu2 %v952_v44  ;;  %v1000_v27 = vld [vmem:[#allocation6 + $0xf38] sm:$0xff]  ;;  %v2624_v7 = vpop.f32.mrf.mxu2 }
 0x1ad   : > { %1677 = vmatpush.msrb.mxu3 %v1020_v8  ;;  %1619 = vmatpush.msrb.mxu0 %v820_v53  ;;  %v800_v28 = vld [vmem:[#allocation6 + $0x8f8] sm:$0xff]  ;;  %v1233_v8 = vpop.f32.mrf.mxu0 }
 0x1ae   : > { %1639 = vmatpush.msrb.mxu1 %v884_v9  ;;  %1659 = vmatpush.msrb.mxu2 %v948_v49  ;;  %v864_v29 = vld [vmem:[#allocation6 + $0xaf8] sm:$0xff] }
 0x1af   : > { %1678 = vmatpush.msrb.mxu3 %v1016_v50  ;;  %1620 = vmatpush.msrb.mxu0 %v816_v59  ;;  %v928_v30 = vld [vmem:[#allocation6 + $0xcf8] sm:$0xff]  ;;  %v1074_v50 = vadd.f32 %v2607_v20, %v1027_v63  ;;  %v1729_v20 = vld [vmem:[#allocation9 + $0xe8] sm:$0xff] }
 0x1b0   : > { %1640 = vmatpush.msrb.mxu1 %v880_v10  ;;  %1660 = vmatpush.msrb.mxu2 %v944_v11  ;;  %v996_v31 = vld [vmem:[#allocation6 + $0xf18] sm:$0xff]  ;;  %v1234_v11 = vadd.f32 %v1233_v8, %v1028_v6  ;;  %v1741_v63 = vld [vmem:[#allocation9 + $0x148] sm:$0xff]  ;;  %v1740_v6 = vld [vmem:[#allocation9 + $0x140] sm:$0xff] }
 0x1b1   : > { %1679 = vmatpush.msrb.mxu3 %v1012_v12  ;;  %1621 = vmatpush.msrb.mxu0 %v812_v61  ;;  %v796_v34 = vld [vmem:[#allocation6 + $0x8d8] sm:$0xff]  ;;  %v2628_v12 = vpop.f32.mrf.mxu3 }
 0x1b2   : > { %1641 = vmatpush.msrb.mxu1 %v876_v13  ;;  %1661 = vmatpush.msrb.mxu2 %v940_v14  ;;  %v860_v35 = vld [vmem:[#allocation6 + $0xad8] sm:$0xff] }
 0x1b3   : > { %1680 = vmatpush.msrb.mxu3 %v1008_v15  ;;  %1622 = vmatpush.msrb.mxu0 %v808_v16  ;;  %v924_v36 = vld [vmem:[#allocation6 + $0xcd8] sm:$0xff]  ;;  %v1094_v16 = vadd.f32 %v2609_v33, %v1074_v50 }
 0x1b4   : > { %1642 = vmatpush.msrb.mxu1 %v872_v17  ;;  %1662 = vmatpush.msrb.mxu2 %v936_v18  ;;  %v992_v37 = vld [vmem:[#allocation6 + $0xef8] sm:$0xff]  ;;  %v2102_v17 = vld.sshfl [vmem:[#allocation1 + $0x20] sm:$0xff pattern:$0x73625140] }
 0x1b5   : > { %1681 = vmatpush.msrb.mxu3 %v1004_v19  ;;  %1623 = vmatpush.msrb.mxu0 %v804_v21  ;;  %v792_v38 = vld [vmem:[#allocation6 + $0x8b8] sm:$0xff]  ;;  %v2103_v18 = vld.sshfl [vmem:[#allocation1 + $0x38] sm:$0xff pattern:$0x73625140]  ;;  %v1713_v19 = vld [vmem:[#allocation9 + $0x68] sm:$0xff] }
 0x1b6   : > { %1643 = vmatpush.msrb.mxu1 %v868_v22  ;;  %1663 = vmatpush.msrb.mxu2 %v932_v23  ;;  %v856_v39 = vld [vmem:[#allocation6 + $0xab8] sm:$0xff]  ;;  %v1273_v22 = vpop.f32.mrf.mxu2 }
 0x1b7   : > { %1682 = vmatpush.msrb.mxu3 %v1000_v27  ;;  %1624 = vmatpush.msrb.mxu0 %v800_v28  ;;  %v920_v40 = vld [vmem:[#allocation6 + $0xcb8] sm:$0xff]  ;;  %v2104_v27 = vld.sshfl [vmem:[#allocation1 + $0x28] sm:$0xff pattern:$0x73625140]  ;;  %v1712_v28 = vld [vmem:[#allocation9 + $0x60] sm:$0xff] }
 0x1b8   : > { %1644 = vmatpush.msrb.mxu1 %v864_v29  ;;  %1664 = vmatpush.msrb.mxu2 %v928_v30  ;;  %v988_v41 = vld [vmem:[#allocation6 + $0xed8] sm:$0xff]  ;;  %v1728_v29 = vld [vmem:[#allocation9 + $0xe0] sm:$0xff]  ;;  %v1745_v30 = vld [vmem:[#allocation9 + $0x168] sm:$0xff] }
 0x1b9   : > { %1683 = vmatpush.msrb.mxu3 %v996_v31  ;;  %1625 = vmatpush.msrb.mxu0 %v796_v34  ;;  %v788_v43 = vld [vmem:[#allocation6 + $0x898] sm:$0xff]  ;;  %v1114_v31 = vadd.f32 %v2611_v42, %v1094_v16  ;;  %v1313_v42 = vpop.f32.mrf.mxu0 }
 0x1ba   : > { %1645 = vmatpush.msrb.mxu1 %v860_v35  ;;  %1665 = vmatpush.msrb.mxu2 %v924_v36  ;;  %v852_v45 = vld [vmem:[#allocation6 + $0xa98] sm:$0xff]  ;;  %v1293_v36 = vpop.f32.mrf.mxu3 }
 0x1bb   : > { %1684 = vmatpush.msrb.mxu3 %v992_v37  ;;  %1626 = vmatpush.msrb.mxu0 %v792_v38  ;;  %v916_v46 = vld [vmem:[#allocation6 + $0xc98] sm:$0xff]  ;;  %v1744_v37 = vld [vmem:[#allocation9 + $0x160] sm:$0xff] }
 0x1bc   : > { %1646 = vmatpush.msrb.mxu1 %v856_v39  ;;  %v984_v47 = vld [vmem:[#allocation6 + $0xeb8] sm:$0xff]  ;;  %1666 = vmatpush.msrb.mxu2 %v920_v40 }
 0x1bd   : > { %1685 = vmatpush.msrb.mxu3 %v988_v41  ;;  %v784_v52 = vld [vmem:[#allocation6 + $0x878] sm:$0xff]  ;;  %1627 = vmatpush.msrb.mxu0 %v788_v43  ;;  %v1134_v41 = vadd.f32 %v2615_v57, %v1114_v31 }
 0x1be   : > { %1647 = vmatpush.msrb.mxu1 %v852_v45  ;;  %v848_v56 = vld [vmem:[#allocation6 + $0xa78] sm:$0xff]  ;;  %1667 = vmatpush.msrb.mxu2 %v916_v46  ;;  %v1709_v45 = vld [vmem:[#allocation9 + $0x48] sm:$0xff] }
 0x1bf   : > { %v912_v26 = vld [vmem:[#allocation6 + $0xc78] sm:$0xff]  ;;  %1686 = vmatpush.msrb.mxu3 %v984_v47  ;;  %1628 = vmatpush.msrb.mxu0 %v784_v52  ;;  %v1725_v46 = vld [vmem:[#allocation9 + $0xc8] sm:$0xff]  ;;  %v1708_v52 = vld [vmem:[#allocation9 + $0x40] sm:$0xff] }
 0x1c0   : > { %v980_v0 = vld [vmem:[#allocation6 + $0xe98] sm:$0xff]  ;;  %1648 = vmatpush.msrb.mxu1 %v848_v56  ;;  %1668 = vmatpush.msrb.mxu2 %v912_v26  ;;  %v1724_v56 = vld [vmem:[#allocation9 + $0xc0] sm:$0xff]  ;;  %v1154_v26 = vadd.f32 %v2613_v51, %v1134_v41 }
 0x1c1   : > { %v2099_v24 = vld.sshfl [vmem:[#allocation1 + $0x10] sm:$0xff pattern:$0x73625140]  ;;  %1687 = vmatpush.msrb.mxu3 %v980_v0  ;;  %1552 = vmatmul.f32.vlgmr.msra.gmra.mxu0 %v2596_v48  ;;  %v1704_v51 = vld [vmem:[#allocation9 + $0x20] sm:$0xff] }
 0x1c2   : > { %1592 = vmatmul.f32.vlgmr.msra.gmra.mxu2 %v2099_v24  ;;  %v780_v1 = vld [vmem:[#allocation6 + $0x858] sm:$0xff]  ;;  %1612 = vmatmul.f32.vlgmr.msra.gmra.mxu3 %v2100_v55 }
 0x1c3   : > { %v844_v2 = vld [vmem:[#allocation6 + $0xa58] sm:$0xff]  ;;  %1629 = vmatpush.msrb.mxu0 %v780_v1  ;;  %1572 = vmatmul.f32.vlgmr.msra.gmra.mxu1 %v2600_v62  ;;  %v1253_v62 = vpop.f32.mrf.mxu1 }
 0x1c4   : > { %v908_v4 = vld [vmem:[#allocation6 + $0xc58] sm:$0xff]  ;;  %1649 = vmatpush.msrb.mxu1 %v844_v2  ;;  %v1254_v21 = vadd.f32 %v1253_v62, %v1234_v11  ;;  %v1701_v62 = vld [vmem:[#allocation9 + $0x8] sm:$0xff] }
 0x1c5   : > { %v976_v54 = vld [vmem:[#allocation6 + $0xe78] sm:$0xff]  ;;  %1669 = vmatpush.msrb.mxu2 %v908_v4 }
 0x1c6   : > { %v776_v58 = vld [vmem:[#allocation6 + $0x838] sm:$0xff]  ;;  %1688 = vmatpush.msrb.mxu3 %v976_v54  ;;  %v1274_v33 = vadd.f32 %v1273_v22, %v1254_v21  ;;  %v1174_v54 = vadd.f32 %v2619_v32, %v1154_v26  ;;  %v1373_v32 = vpop.f32.mrf.mxu3  ;;  %v1757_v26 = vld [vmem:[#allocation9 + $0x1c8] sm:$0xff] }
 0x1c7   : > { %v840_v60 = vld [vmem:[#allocation6 + $0xa38] sm:$0xff]  ;;  %1630 = vmatpush.msrb.mxu0 %v776_v58  ;;  %v1705_v58 = vld [vmem:[#allocation9 + $0x28] sm:$0xff] }
 0x1c8   : > { %v904_v3 = vld [vmem:[#allocation6 + $0xc38] sm:$0xff]  ;;  %1650 = vmatpush.msrb.mxu1 %v840_v60  ;;  %v1294_v43 = vadd.f32 %v1293_v36, %v1274_v33  ;;  %v1721_v60 = vld [vmem:[#allocation9 + $0xa8] sm:$0xff] }
 0x1c9   : > { %v972_v5 = vld [vmem:[#allocation6 + $0xe58] sm:$0xff]  ;;  %1670 = vmatpush.msrb.mxu2 %v904_v3  ;;  %v1353_v3 = vpop.f32.mrf.mxu2 }
 0x1ca   : > { %v772_v48 = vld [vmem:[#allocation6 + $0x818] sm:$0xff]  ;;  %1689 = vmatpush.msrb.mxu3 %v972_v5  ;;  %v1314_v0 = vadd.f32 %v1313_v42, %v1294_v43  ;;  %v1720_v5 = vld [vmem:[#allocation9 + $0xa0] sm:$0xff] }
 0x1cb   : > { %v836_v44 = vld [vmem:[#allocation6 + $0xa18] sm:$0xff]  ;;  %1631 = vmatpush.msrb.mxu0 %v772_v48  ;;  %v1333_v57 = vpop.f32.mrf.mxu1  ;;  %v1194_v48 = vadd.f32 %v2624_v7, %v1174_v54  ;;  %v1700_v7 = vld [vmem:[#allocation9] sm:$0xff] }
 0x1cc   : > { %v900_v53 = vld [vmem:[#allocation6 + $0xc18] sm:$0xff]  ;;  %1651 = vmatpush.msrb.mxu1 %v836_v44  ;;  %1632 = vmatmul.f32.vlgmr.msrb.gmra.mxu0 %v2102_v17  ;;  %v1334_v55 = vadd.f32 %v1333_v57, %v1314_v0  ;;  %v1736_v17 = vld [vmem:[#allocation9 + $0x120] sm:$0xff]  ;;  %v1753_v57 = vld [vmem:[#allocation9 + $0x1a8] sm:$0xff] }
 0x1cd   : > { %v968_v9 = vld [vmem:[#allocation6 + $0xe38] sm:$0xff]  ;;  %1671 = vmatpush.msrb.mxu2 %v900_v53  ;;  %1652 = vmatmul.f32.vlgmr.msrb.gmra.mxu1 %v2104_v27  ;;  %v1760_v27 = vld [vmem:[#allocation9 + $0x1e0] sm:$0xff]  ;;  %v1393_v31 = vpop.f32.mrf.mxu0 }
 0x1ce   : > { %v1715_v49 = vld [vmem:[#allocation9 + $0x78] sm:$0xff]  ;;  %1690 = vmatpush.msrb.mxu3 %v968_v9  ;;  %v1714_v13 = vld [vmem:[#allocation9 + $0x70] sm:$0xff]  ;;  %v1354_v44 = vadd.f32 %v1353_v3, %v1334_v55  ;;  %v1756_v0 = vld [vmem:[#allocation9 + $0x1c0] sm:$0xff] }
 0x1cf   : > { %v1731_v59 = vld [vmem:[#allocation9 + $0xf8] sm:$0xff]  ;;  %1768 = vmatpush.msra.mxu0 %v1715_v49  ;;  %v1730_v14 = vld [vmem:[#allocation9 + $0xf0] sm:$0xff]  ;;  %v1749_v55 = vld [vmem:[#allocation9 + $0x188] sm:$0xff] }
 0x1d0   : > { %v964_v10 = vld [vmem:[#allocation6 + $0xe18] sm:$0xff]  ;;  %1788 = vmatpush.msra.mxu1 %v1731_v59  ;;  %v1374_v11 = vadd.f32 %v1373_v32, %v1354_v44 }
 0x1d1   : > { %v2101_v61 = vld.sshfl [vmem:[#allocation1 + $0x30] sm:$0xff pattern:$0x73625140]  ;;  %1691 = vmatpush.msrb.mxu3 %v964_v10  ;;  %1769 = vmatpush.msra.mxu0 %v1714_v13  ;;  %v1214_v10 = vadd.f32 %v2628_v12, %v1194_v48  ;;  %v1716_v13 = vld [vmem:[#allocation9 + $0x80] sm:$0xff] }
 0x1d2   : > { %1672 = vmatmul.f32.vlgmr.msrb.gmra.mxu2 %v2101_v61  ;;  %v1747_v15 = vld [vmem:[#allocation9 + $0x178] sm:$0xff]  ;;  %1692 = vmatmul.f32.vlgmr.msrb.gmra.mxu3 %v2103_v18  ;;  %v1746_v23 = vld [vmem:[#allocation9 + $0x170] sm:$0xff]  ;;  %v1717_v61 = vld [vmem:[#allocation9 + $0x88] sm:$0xff]  ;;  %v1697_v16 = vmax.f32 %v1374_v11, 0.0  ;;  %v1433_v36 = vpop.f32.mrf.mxu2 }
 0x1d3   : > { %1789 = vmatpush.msra.mxu1 %v1730_v14  ;;  %1808 = vmatpush.msra.mxu2 %v1747_v15  ;;  %v1711_v34 = vld [vmem:[#allocation9 + $0x58] sm:$0xff]  ;;  %v1710_v38 = vld [vmem:[#allocation9 + $0x50] sm:$0xff]  ;;  %v1737_v14 = vld [vmem:[#allocation9 + $0x128] sm:$0xff]  ;;  %v1696_v15 = vmax.f32 %v1214_v10, 0.0 }
 0x1d4   : > { %1770 = vmatpush.msra.mxu0 %v1713_v19  ;;  %v1727_v35 = vld [vmem:[#allocation9 + $0xd8] sm:$0xff]  ;;  %v1726_v39 = vld [vmem:[#allocation9 + $0xd0] sm:$0xff]  ;;  %v1733_v19 = vld [vmem:[#allocation9 + $0x108] sm:$0xff] }
 0x1d5   : > { %1790 = vmatpush.msra.mxu1 %v1729_v20  ;;  %1809 = vmatpush.msra.mxu2 %v1746_v23  ;;  %v1743_v40 = vld [vmem:[#allocation9 + $0x158] sm:$0xff]  ;;  %v1742_v47 = vld [vmem:[#allocation9 + $0x150] sm:$0xff]  ;;  %v1732_v20 = vld [vmem:[#allocation9 + $0x100] sm:$0xff] }
 0x1d6   : > { %1771 = vmatpush.msra.mxu0 %v1712_v28  ;;  %v1707_v24 = vld [vmem:[#allocation9 + $0x38] sm:$0xff]  ;;  %v1706_v2 = vld [vmem:[#allocation9 + $0x30] sm:$0xff]  ;;  %v1761_v23 = vld [vmem:[#allocation9 + $0x1e8] sm:$0xff] }
 0x1d7   : > { %1791 = vmatpush.msra.mxu1 %v1728_v29  ;;  %1810 = vmatpush.msra.mxu2 %v1745_v30  ;;  %v1723_v1 = vld [vmem:[#allocation9 + $0xb8] sm:$0xff]  ;;  %v1722_v4 = vld [vmem:[#allocation9 + $0xb0] sm:$0xff]  ;;  %v1029_v29 = vperm.slane %v2617_v25, 2 }
 0x1d8   : > { %1772 = vmatpush.msra.mxu0 %v1711_v34  ;;  %v1703_v8 = vld [vmem:[#allocation9 + $0x18] sm:$0xff]  ;;  %v1702_v49 = vld [vmem:[#allocation9 + $0x10] sm:$0xff] }
 0x1d9   : > { %1792 = vmatpush.msra.mxu1 %v1727_v35  ;;  %1811 = vmatpush.msra.mxu2 %v1744_v37  ;;  %v1719_v53 = vld [vmem:[#allocation9 + $0x98] sm:$0xff]  ;;  %v1718_v50 = vld [vmem:[#allocation9 + $0x90] sm:$0xff]  ;;  %v1394_v33 = vadd.f32 %v1393_v31, %v1029_v29 }
 0x1da   : > { %1773 = vmatpush.msra.mxu0 %v1710_v38  ;;  %v1739_v9 = vld [vmem:[#allocation9 + $0x138] sm:$0xff]  ;;  %v1738_v59 = vld [vmem:[#allocation9 + $0x130] sm:$0xff]  ;;  %v1453_v38 = vpop.f32.mrf.mxu3 }
 0x1db   : > { %1793 = vmatpush.msra.mxu1 %v1726_v39  ;;  %1812 = vmatpush.msra.mxu2 %v1743_v40  ;;  %v1735_v12 = vld [vmem:[#allocation9 + $0x118] sm:$0xff]  ;;  %v1734_v18 = vld [vmem:[#allocation9 + $0x110] sm:$0xff] }
 0x1dc   : > { %1774 = vmatpush.msra.mxu0 %v1709_v45  ;;  %v1763_v21 = vld [vmem:[#allocation9 + $0x1f8] sm:$0xff]  ;;  %v1762_v22 = vld [vmem:[#allocation9 + $0x1f0] sm:$0xff] }
 0x1dd   : > { %1794 = vmatpush.msra.mxu1 %v1725_v46  ;;  %1813 = vmatpush.msra.mxu2 %v1742_v47  ;;  %v1759_v28 = vld [vmem:[#allocation9 + $0x1d8] sm:$0xff]  ;;  %v1758_v30 = vld [vmem:[#allocation9 + $0x1d0] sm:$0xff] }
 0x1de   : > { %1775 = vmatpush.msra.mxu0 %v1708_v52  ;;  %1828 = vmatpush.msra.mxu3 %v1763_v21  ;;  %v1750_v54 = vld [vmem:[#allocation9 + $0x190] sm:$0xff] }
 0x1df   : > { %1795 = vmatpush.msra.mxu1 %v1724_v56  ;;  %1814 = vmatpush.msra.mxu2 %v1741_v63 }
 0x1e0   : > { %1776 = vmatpush.msra.mxu0 %v1707_v24  ;;  %1829 = vmatpush.msra.mxu3 %v1762_v22  ;;  %v1755_v24 = vld [vmem:[#allocation9 + $0x1b8] sm:$0xff] }
 0x1e1   : > { %1796 = vmatpush.msra.mxu1 %v1723_v1  ;;  %1815 = vmatpush.msra.mxu2 %v1740_v6  ;;  %v1754_v1 = vld [vmem:[#allocation9 + $0x1b0] sm:$0xff] }
 0x1e2   : > { %1777 = vmatpush.msra.mxu0 %v1706_v2  ;;  %1830 = vmatpush.msra.mxu3 %v1761_v23  ;;  %v1752_v2 = vld [vmem:[#allocation9 + $0x1a0] sm:$0xff] }
 0x1e3   : > { %1797 = vmatpush.msra.mxu1 %v1722_v4  ;;  %1816 = vmatpush.msra.mxu2 %v1739_v9  ;;  %v1751_v4 = vld [vmem:[#allocation9 + $0x198] sm:$0xff] }
 0x1e4   : > { %1778 = vmatpush.msra.mxu0 %v1705_v58  ;;  %1831 = vmatpush.msra.mxu3 %v1760_v27  ;;  %v1748_v58 = vld [vmem:[#allocation9 + $0x180] sm:$0xff] }
 0x1e5   : > { %1798 = vmatpush.msra.mxu1 %v1721_v60  ;;  %1817 = vmatpush.msra.mxu2 %v1738_v59  ;;  %v1030_v60 = vperm.slane %v2617_v25, 3 }
 0x1e6   : > { %1779 = vmatpush.msra.mxu0 %v1704_v51  ;;  %1832 = vmatpush.msra.mxu3 %v1759_v28 }
 0x1e7   : > { %1799 = vmatpush.msra.mxu1 %v1720_v5  ;;  %1818 = vmatpush.msra.mxu2 %v1737_v14 }
 0x1e8   : > { %1780 = vmatpush.msra.mxu0 %v1703_v8  ;;  %1833 = vmatpush.msra.mxu3 %v1758_v30 }
 0x1e9   : > { %1800 = vmatpush.msra.mxu1 %v1719_v53  ;;  %1819 = vmatpush.msra.mxu2 %v1736_v17 }
 0x1ea   : > { %1781 = vmatpush.msra.mxu0 %v1702_v49  ;;  %1834 = vmatpush.msra.mxu3 %v1757_v26 }
 0x1eb   : > { %1801 = vmatpush.msra.mxu1 %v1718_v50  ;;  %1820 = vmatpush.msra.mxu2 %v1735_v12 }
 0x1ec   : > { %1782 = vmatpush.msra.mxu0 %v1701_v62  ;;  %1835 = vmatpush.msra.mxu3 %v1756_v0 }
 0x1ed   : > { %1802 = vmatpush.msra.mxu1 %v1717_v61  ;;  %1821 = vmatpush.msra.mxu2 %v1734_v18  ;;  %v2096_v61 = vld [vmem:[#allocation11] ss:$0 sm:$0xff] }
 0x1ee   : > { %1783 = vmatpush.msra.mxu0 %v1700_v7  ;;  %1836 = vmatpush.msra.mxu3 %v1755_v24 }
 0x1ef   : > { %1803 = vmatpush.msra.mxu1 %v1716_v13  ;;  %1784 = vmatmul.f32.vlgmr.msra.gmra.mxu0 %v1696_v15 }
 0x1f0   : > { %1804 = vmatmul.f32.vlgmr.msra.gmra.mxu1 %v1697_v16  ;;  %1822 = vmatpush.msra.mxu2 %v1733_v19 }
 0x1f1   : > { %1837 = vmatpush.msra.mxu3 %v1754_v1 }
 0x1f2   : > { %1823 = vmatpush.msra.mxu2 %v1732_v20 }
 0x1f3   : > { %1838 = vmatpush.msra.mxu3 %v1753_v57 }
 0x1f5   : > { %1839 = vmatpush.msra.mxu3 %v1752_v2 }
 0x1f7   : > { %1840 = vmatpush.msra.mxu3 %v1751_v4 }
 0x1f9   : > { %1841 = vmatpush.msra.mxu3 %v1750_v54 }
 0x1fb   : > { %1842 = vmatpush.msra.mxu3 %v1749_v55 }
 0x1fd   : > { %1843 = vmatpush.msra.mxu3 %v1748_v58 }
 0x1ff   : > { %v1413_v34 = vpop.f32.mrf.mxu1 }
 0x200   : > { %v1414_v35 = vadd.f32 %v1413_v34, %v1394_v33 }
 0x201   : > { %v1473_v40 = vpop.f32.mrf.mxu0 }
 0x202   : > { %v1434_v37 = vadd.f32 %v1433_v36, %v1414_v35 }
 0x204   : > { %v1454_v39 = vadd.f32 %v1453_v38, %v1434_v37 }
 0x206   : > { %v1474_v41 = vadd.f32 %v1473_v40, %v1454_v39 }
 0x208   : > { %v1493_v43 = vpop.f32.mrf.mxu1 }
 0x209   : > { %v1494_v45 = vadd.f32 %v1493_v43, %v1474_v41  ;;  %v1513_v46 = vpop.f32.mrf.mxu2 }
 0x20b   : > { %v1514_v42 = vadd.f32 %v1513_v46, %v1494_v45 }
 0x20c   : > { %v1533_v47 = vpop.f32.mrf.mxu3 }
 0x20d   : > { %v1534_v52 = vadd.f32 %v1533_v47, %v1514_v42 }
 0x20f   : > { %v1698_v56 = vmax.f32 %v1534_v52, 0.0 }
 0x211   : > { %1824 = vmatmul.f32.vlgmr.msra.gmra.mxu2 %v1698_v56 }
 0x23e   : > { %v1553_v63 = vpop.f32.mrf.mxu0 }
 0x23f   : > { %v1554_v3 = vadd.f32 %v1553_v63, %v1030_v60 }
 0x240   : > { %v1573_v51 = vpop.f32.mrf.mxu1 }
 0x241   : > { %v1574_v5 = vadd.f32 %v1573_v51, %v1554_v3 }
 0x245   : > { %v1593_v6 = vpop.f32.mrf.mxu2  ;;  %v1613_v44 = vpop.f32.mrf.mxu3 }
 0x246   : > { %v1594_v48 = vadd.f32 %v1593_v6, %v1574_v5 }
 0x248   : > { %v1614_v8 = vadd.f32 %v1613_v44, %v1594_v48 }
 0x249   : > { %v1633_v53 = vpop.f32.mrf.mxu0 }
 0x24a   : > { %v1634_v32 = vadd.f32 %v1633_v53, %v1614_v8  ;;  %v1653_v9 = vpop.f32.mrf.mxu1 }
 0x24c   : > { %v1654_v49 = vadd.f32 %v1653_v9, %v1634_v32 }
 0x255   : > { %v1673_v50 = vpop.f32.mrf.mxu2  ;;  %v1693_v10 = vpop.f32.mrf.mxu3 }
 0x256   : > { %v1674_v59 = vadd.f32 %v1673_v50, %v1654_v49 }
 0x258   : > { %v1694_v11 = vadd.f32 %v1693_v10, %v1674_v59 }
 0x25a   : > { %v1699_v62 = vmax.f32 %v1694_v11, 0.0 }
 0x25c   : > { %1844 = vmatmul.f32.vlgmr.msra.gmra.mxu3 %v1699_v62 }
 0x26c   : > { %v1785_v25 = vpop.f32.mrf.mxu0 }
 0x26d   : > { %v1786_v7 = vadd.f32 %v2096_v61, %v1785_v25  ;;  %v1805_v13 = vpop.f32.mrf.mxu1 }
 0x26f   : > { %v1806_v15 = vadd.f32 %v1805_v13, %v1786_v7 }
 0x294   : > { %v1825_v14 = vpop.f32.mrf.mxu2 }
 0x295   : > { %v1826_v16 = vadd.f32 %v1825_v14, %v1806_v15 }
 0x2df   : > { %v1845_v17 = vpop.f32.mrf.mxu3 }
 0x2e0   : > { %v1846_v12 = vadd.f32 %v1845_v17, %v1826_v16 }
 0x2e2   : > { %1848 = vst [vmem:[#allocation12] sm:$0x3] %v1846_v12 }
 0x2e3 PF: > { %s2674_s21 = sadd.s32 4294967295, %s2345_s23   ;;  %s1859_s26 = sshll.u32 %s2667_s5, 4  ;;  %s1860_s26 = int_to_ptr.hbm [resolvable:$true] %s1859_s26 }
 0x2e4   : > { %p2033_p3 = scmp.eq.s32.totalorder %s2674_s21, 1  ;;  %s2359_s30 = smov [#allocation12]  }
 0x2e5   : > { %s1857_s15 = sshll.u32 %s2359_s30, 4  ;;  %s1858_s15 = int_to_ptr.vmem [resolvable:$true] %s1857_s15 }
 0x2e6   : > { %2004 = dma.vmem_to_hbm [thread:$0]  (%p2033_p3), %s1858_s15, 32, %s1860_s26, [#allocation5]  }
 0x2e7   : > { %2320 = dma.done.wait (%p2033_p3), [#allocation5], 32  }
 0x2e8   : > { %2322 = vsyncadd (%p2033_p3), [#allocation5], 4294967264 }
 0x2e9 PF: > { %s21_s23 = sadd.s32 1, %s2345_s23   ;;  %s2675_s18 = smov %s2329_s19 }
 0x2ea   : > { %p18_p4 = scmp.ge.s32.totalorder %s21_s23, 4   ;;  %s2676_s19 = smov %s2333_s20 }
 0x2eb   : > { %s2677_s20 = smov %s2483_s27  ;;  %s2678_s21 = smov %s2341_s22 }
 0x2ec   : > { %s2679_s22 = smov %s2681_s13  ;;  %20 = sbr.rel (!%p18_p4) target bundleno = 7 (0x7), region = 103 }
 0x2f1   :  { %1873 = vsyncpa [#allocation4], 1 }
 0x2f2   :  { %1875 = vsyncpa [#allocation4 + $0x1], 1 }
 0x2f3   :  { %1876 = vsyncpa [#allocation7], 1 }
 0x2f4   :  { %1877 = vsyncpa [#allocation10], 1 }
 0x2f5   :  { %1878 = vsyncpa [#allocation5], 1 }
 0x2f6   :  { %1880 = vsyncpa [#allocation5 + $0x1], 1 }

</bundles_post_ra>
